<compile_context>
chip_gen: v7x
topology: tpu7x:2x2x1
jax: 0.10.0
libtpu: 0.0.40
codegen_flags: <defaults>
</compile_context>

<pallas_src>
import functools

import jax
import jax.numpy as jnp
from jax import lax
from jax.experimental import pallas as pl
from jax.experimental.pallas import tpu as pltpu

LN_EPS = 1e-5  # PyTorch nn.LayerNorm default


# ---------------------------------------------------------------------------
# Shared math (used inside the kernels and by the plain-JAX reference)
# ---------------------------------------------------------------------------
def _dot(a, w):
    """MXU matmul: cast activations to the weight dtype (bf16), accumulate in f32."""
    return jnp.dot(a.astype(w.dtype), w, preferred_element_type=jnp.float32)


def _layernorm(y, gamma, beta):
    # One-pass variance (E[y^2] - E[y]^2): both XLU reductions issue on raw y.
    mean = jnp.mean(y, axis=-1, keepdims=True)
    mean_sq = jnp.mean(y * y, axis=-1, keepdims=True)
    var = jnp.maximum(mean_sq - mean * mean, 0.0)
    return (y - mean) * lax.rsqrt(var + LN_EPS) * gamma + beta


def _resblock(x, w1, b1, w2, w3, b23, gamma, beta):
    """LayerNorm(relu(x@w1 + b1)@w2 + x@w3 + (b2+b3)) * gamma + beta."""
    h = jnp.maximum(_dot(x, w1) + b1, 0.0)
    y = _dot(h, w2) + _dot(x, w3) + b23
    return _layernorm(y, gamma, beta)


def _resblock_split(xa, xb, w1a, w1b, b1, w2, w3a, w3b, b23, gamma, beta):
    """ResBlock on concat([xa, xb], -1) without materializing the concat."""
    h = jnp.maximum(_dot(xa, w1a) + _dot(xb, w1b) + b1, 0.0)
    y = _dot(h, w2) + _dot(xa, w3a) + _dot(xb, w3b) + b23
    return _layernorm(y, gamma, beta)


def _hoist_vectors(group, rows):
    """Broadcast the (1, d) vectors of a layer once, outside the layer loop."""
    w1, b1, w2, w3, b23, g, bt = group
    bc = lambda v: jnp.broadcast_to(v, (rows, v.shape[-1]))
    return (w1, bc(b1), w2, w3, bc(b23), bc(g), bc(bt))


# ---------------------------------------------------------------------------
# Kernels
# ---------------------------------------------------------------------------
def _feature_encoder_kernel(x_ref, w1, b1, w2, w3, b23, g, bt, o_ref):
    # rows = a tile of (B*T); per-timestep feature-encoder ResBlock.
    o_ref[...] = _resblock(x_ref[...], w1[...], b1[...], w2[...], w3[...],
                           b23[...], g[...], bt[...]).astype(o_ref.dtype)


def _encdec_kernel(n_layers, x_ref, f_ref, *rest):
    # rows = a tile of B.  Fused: enc_first (split GEMM over [X | feature]),
    # (n_layers-1)x shared encoder, (n_layers-1)x shared decoder, dec_final.
    o_ref = rest[-1]
    w = [r[...] for r in rest[:-1]]
    e1, es, ds, df = w[0:9], w[9:16], w[16:23], w[23:30]
    rows = x_ref.shape[0]

    hidden = _resblock_split(x_ref[...], f_ref[...], *e1)

    es = _hoist_vectors(es, rows)
    ds = _hoist_vectors(ds, rows)
    hidden = lax.fori_loop(0, n_layers - 1, lambda _, h: _resblock(h, *es),
                           hidden, unroll=True)
    hidden = lax.fori_loop(0, n_layers - 1, lambda _, h: _resblock(h, *ds),
                           hidden, unroll=True)

    # lane-dense (rows, n_steps * n_features) output slab (bf16 intermediate)
    o_ref[...] = _resblock(hidden, *df).astype(o_ref.dtype)


def _temporal_kernel(f_ref, d_ref, x_ref,
                     w1f, w1d, b1, w2, w3f, w3d, b23, g, bt, rw, rb, o_ref):
    # rows = a tile of (B*T); temporal decoder ResBlock on cat([feature, decoded])
    # done as a split GEMM, fused with `prediction += residual_proj(X)`.
    pred = _resblock_split(f_ref[...], d_ref[...],
                           w1f[...], w1d[...], b1[...], w2[...],
                           w3f[...], w3d[...], b23[...], g[...], bt[...])
    resid = _dot(x_ref[...], rw[...]) + rb[...]
    o_ref[...] = (pred + resid).astype(o_ref.dtype)


# ---------------------------------------------------------------------------
# BlockSpec / tiling / compiler-parameter helpers
# ---------------------------------------------------------------------------
try:
    # Single-buffer the resident weights (they never change across the row grid).
    _WEIGHT_PIPELINE_MODE = pl.Buffered(buffer_count=1)
except Exception:                                    # very old/odd API variants
    _WEIGHT_PIPELINE_MODE = None


def _weight_spec(w):
    # Full block, constant index_map -> DMA'd once, resident across the row grid.
    idx_map = lambda i: (0, 0)
    if _WEIGHT_PIPELINE_MODE is not None:
        try:
            return pl.BlockSpec(w.shape, idx_map, pipeline_mode=_WEIGHT_PIPELINE_MODE)
        except TypeError:
            pass
    return pl.BlockSpec(w.shape, idx_map)


def _round_up(x, m):
    return ((x + m - 1) // m) * m


def _pick_block(n_rows, max_rows, min_steps=1):
    """Row-tile: full array when tiny, else a multiple of 8 aiming for at least
    `min_steps` grid steps (megacore sharding / DMA overlap) under `max_rows`."""
    if n_rows <= 8:
        return n_rows
    tile = min(max_rows, _round_up(pl.cdiv(n_rows, min_steps), 8))
    if tile >= n_rows:
        return n_rows
    return max(8, tile)


def _bytes_of(*arrays):
    return sum(int(a.size) * a.dtype.itemsize for a in arrays)


def _vmem_cap_bytes():
    try:
        cap = int(pltpu.get_tpu_info().vmem_capacity_bytes)   # physical VMEM
    except Exception:
        cap = 64 << 20                                        # v7x-sized fallback
    return max(cap - (8 << 20), 16 << 20)


def _compiler_params(weight_bytes, act_tile_bytes, temp_bytes):
    # Weights single-buffered, activation tiles double-buffered, plus temporaries.
    need = int(weight_bytes + 2 * act_tile_bytes + temp_bytes)
    limit = max(int(need * 1.4) + (2 << 20), 32 << 20)
    limit = min(limit, _vmem_cap_bytes())
    return pltpu.CompilerParams(dimension_semantics=("parallel",),
                                vmem_limit_bytes=limit)


def _rb_flops(rows, d_in, d_hid, d_out):
    return 2 * rows * (d_in * d_hid + d_hid * d_out + d_in * d_out)


# ---------------------------------------------------------------------------
# pallas_call wrappers
# ---------------------------------------------------------------------------
def _run_feature_encoder(dyn_rows, p, block_rows):
    rows, n_feat = dyn_rows.shape
    d_hid = p["w1"].shape[1]
    d_fe = p["w2"].shape[1]
    out_dtype = p["w2"].dtype            # bf16 intermediate: consumed only by dots
    weights = (p["w1"], p["b1"], p["w2"], p["w3"], p["b23"], p["gamma"], p["beta"])
    tr = _pick_block(rows, block_rows)

    w_bytes = _bytes_of(*weights)
    tile_bytes = (tr * n_feat * dyn_rows.dtype.itemsize
                  + tr * d_fe * out_dtype.itemsize)
    temp_bytes = 6 * tr * max(d_hid, 128) * 4
    cost = pl.CostEstimate(
        flops=int(_rb_flops(rows, n_feat, d_hid, d_fe)),
        transcendentals=int(rows),
        bytes_accessed=int(_bytes_of(dyn_rows) + w_bytes
                           + rows * d_fe * out_dtype.itemsize))

    return pl.pallas_call(
        _feature_encoder_kernel,
        grid=(pl.cdiv(rows, tr),),
        out_shape=jax.ShapeDtypeStruct((rows, d_fe), out_dtype),
        in_specs=[pl.BlockSpec((tr, n_feat), lambda i: (i, 0))]
                 + [_weight_spec(w) for w in weights],
        out_specs=pl.BlockSpec((tr, d_fe), lambda i: (i, 0)),
        compiler_params=_compiler_params(w_bytes, tile_bytes, temp_bytes),
        cost_estimate=cost,
    )(dyn_rows, *weights)


def _run_encdec(x_btf, feat_btf, params, n_layers, batch_block):
    bsz, d_x = x_btf.shape
    d_f = feat_btf.shape[1]
    e1, es, ds, df = (params["enc_first"], params["enc_shared"],
                      params["dec_shared"], params["dec_final"])
    weights = (
        e1["w1a"], e1["w1b"], e1["b1"], e1["w2"], e1["w3a"], e1["w3b"],
        e1["b23"], e1["gamma"], e1["beta"],
        es["w1"], es["b1"], es["w2"], es["w3"], es["b23"], es["gamma"], es["beta"],
        ds["w1"], ds["b1"], ds["w2"], ds["w3"], ds["b23"], ds["gamma"], ds["beta"],
        df["w1"], df["b1"], df["w2"], df["w3"], df["b23"], df["gamma"], df["beta"],
    )
    d_hidden = e1["w2"].shape[1]
    d_out = df["w2"].shape[1]
    out_dtype = df["w2"].dtype           # bf16 intermediate: consumed only by dots
    # At least 4 grid steps when the batch allows it (v7x megacore + DMA overlap).
    tb = _pick_block(bsz, batch_block, min_steps=4)

    w_bytes = _bytes_of(*weights)
    tile_bytes = (tb * d_x * x_btf.dtype.itemsize
                  + tb * d_f * feat_btf.dtype.itemsize
                  + tb * d_out * out_dtype.itemsize)
    hid_max = max(e1["w2"].shape[0], es["w2"].shape[0], df["w2"].shape[0], d_hidden)
    temp_bytes = 12 * tb * hid_max * 4 + 3 * tb * d_out * 4

    flops = (_rb_flops(bsz, d_x + d_f, e1["w2"].shape[0], d_hidden)
             + 2 * (n_layers - 1) * _rb_flops(bsz, d_hidden, es["w2"].shape[0], d_hidden)
             + _rb_flops(bsz, d_hidden, df["w2"].shape[0], d_out))
    cost = pl.CostEstimate(
        flops=int(flops),
        transcendentals=int(bsz * 2 * n_layers),
        bytes_accessed=int(_bytes_of(x_btf, feat_btf) + w_bytes
                           + bsz * d_out * out_dtype.itemsize))

    return pl.pallas_call(
        functools.partial(_encdec_kernel, n_layers),
        grid=(pl.cdiv(bsz, tb),),
        out_shape=jax.ShapeDtypeStruct((bsz, d_out), out_dtype),
        in_specs=[pl.BlockSpec((tb, d_x), lambda i: (i, 0)),
                  pl.BlockSpec((tb, d_f), lambda i: (i, 0))]
                 + [_weight_spec(w) for w in weights],
        out_specs=pl.BlockSpec((tb, d_out), lambda i: (i, 0)),
        compiler_params=_compiler_params(w_bytes, tile_bytes, temp_bytes),
        cost_estimate=cost,
    )(x_btf, feat_btf, *weights)


def _run_temporal(feature_rows, dec_rows, x_rows, p_td, rw, rb, block_rows):
    rows, n_feat = x_rows.shape
    d_fe = feature_rows.shape[1]
    d_hid = p_td["w2"].shape[0]
    weights = (p_td["w1a"], p_td["w1b"], p_td["b1"], p_td["w2"],
               p_td["w3a"], p_td["w3b"], p_td["b23"], p_td["gamma"], p_td["beta"],
               rw, rb)
    tr = _pick_block(rows, block_rows)

    w_bytes = _bytes_of(*weights)
    tile_bytes = (tr * d_fe * feature_rows.dtype.itemsize
                  + tr * n_feat * dec_rows.dtype.itemsize
                  + tr * n_feat * x_rows.dtype.itemsize
                  + tr * n_feat * 4)
    temp_bytes = 6 * tr * max(d_hid, 128) * 4
    flops = _rb_flops(rows, d_fe + n_feat, d_hid, n_feat) + 2 * rows * n_feat * n_feat
    cost = pl.CostEstimate(
        flops=int(flops),
        transcendentals=int(rows),
        bytes_accessed=int(_bytes_of(feature_rows, dec_rows, x_rows) + w_bytes
                           + rows * n_feat * 4))

    act_specs = [pl.BlockSpec((tr, d_fe), lambda i: (i, 0)),
                 pl.BlockSpec((tr, n_feat), lambda i: (i, 0)),
                 pl.BlockSpec((tr, n_feat), lambda i: (i, 0))]
    return pl.pallas_call(
        _temporal_kernel,
        grid=(pl.cdiv(rows, tr),),
        out_shape=jax.ShapeDtypeStruct((rows, n_feat), jnp.float32),
        in_specs=act_specs + [_weight_spec(w) for w in weights],
        out_specs=pl.BlockSpec((tr, n_feat), lambda i: (i, 0)),
        compiler_params=_compiler_params(w_bytes, tile_bytes, temp_bytes),
        cost_estimate=cost,
    )(feature_rows, dec_rows, x_rows, *weights)


# ---------------------------------------------------------------------------
# TiDE forward — 3 fused, row-tiled Pallas kernels, free HBM reshapes between.
# ---------------------------------------------------------------------------
@functools.partial(jax.jit, static_argnames=("n_layers", "batch_block", "row_block"))
def tide_forward(X, dynamic, params, *, n_layers, batch_block=128, row_block=2048):
    bsz, n_steps, n_features = X.shape
    d_fe = params["feature_encoder"]["w2"].shape[1]

    # (1) per-(b, t) feature encoder on B*T rows (bf16 intermediate)
    dyn_rows = dynamic.reshape(bsz * n_steps, n_features)
    feature_rows = _run_feature_encoder(dyn_rows, params["feature_encoder"], row_block)

    # (2) fused encoder/decoder stack on B rows; the [X | feature] concat is a
    #     split GEMM inside the kernel (no HBM concat materialized)
    x_btf = X.reshape(bsz, n_steps * n_features)
    feat_btf = feature_rows.reshape(bsz, n_steps * d_fe)
    decoded_btf = _run_encdec(x_btf, feat_btf, params, n_layers, batch_block)

    # (3) temporal decoder + residual projection on B*T rows
    dec_rows = decoded_btf.reshape(bsz * n_steps, n_features)
    x_rows = X.reshape(bsz * n_steps, n_features)
    pred_rows = _run_temporal(feature_rows, dec_rows, x_rows,
                              params["temporal_decoder"],
                              params["residual_w"], params["residual_b"], row_block)
    return pred_rows.reshape(bsz, n_steps, n_features)


# ---------------------------------------------------------------------------
# Parameter construction (deterministic, synthetic) + kernel-layout prep
# ---------------------------------------------------------------------------
def _linear_params(key, d_in, d_out):
    kw, kb = jax.random.split(key)
    bound = 1.0 / jnp.sqrt(d_in)
    w = jax.random.uniform(kw, (d_in, d_out), jnp.float32, -bound, bound)
    b = jax.random.uniform(kb, (1, d_out), jnp.float32, -bound, bound)
    return w, b


def _resblock_params(key, d_in, d_hidden, d_out):
    k1, k2, k3 = jax.random.split(key, 3)
    w1, b1 = _linear_params(k1, d_in, d_hidden)
    w2, b2 = _linear_params(k2, d_hidden, d_out)
    w3, b3 = _linear_params(k3, d_in, d_out)
    return dict(w1=w1, b1=b1, w2=w2, b2=b2, w3=w3, b3=b3,
                gamma=jnp.ones((1, d_out), jnp.float32),
                beta=jnp.zeros((1, d_out), jnp.float32))


def make_tide_params(key, n_steps, n_features, n_layers, d_hidden,
                     d_feature_encode, d_temporal_decoder_hidden):
    d_flatten = n_steps * n_features + n_steps * d_feature_encode
    keys = jax.random.split(key, 7)
    params = {
        "feature_encoder": _resblock_params(keys[0], n_features, d_hidden,
                                            d_feature_encode),
        "enc_first": _resblock_params(keys[1], d_flatten, d_hidden, d_hidden),
        "enc_shared": _resblock_params(keys[2], d_hidden, d_hidden, d_hidden),
        "dec_shared": _resblock_params(keys[3], d_hidden, d_hidden, d_hidden),
        "dec_final": _resblock_params(keys[4], d_hidden, d_hidden,
                                      n_features * n_steps),
        "temporal_decoder": _resblock_params(
            keys[5], n_features + d_feature_encode,
            d_temporal_decoder_hidden, n_features),
    }
    rw, rb = _linear_params(keys[6], n_features, n_features)
    params["residual_w"] = rw
    params["residual_b"] = rb
    return params


def _pad_hidden(p, multiple):
    """Zero-pad the fc1 hidden width to a multiple (exact: relu(0)=0 and zero fc2
    rows contribute nothing).  LayerNorm'd output dims are never padded."""
    d_hid = p["w1"].shape[1]
    pad = (-d_hid) % multiple if multiple > 1 else 0
    if pad == 0:
        return p
    q = dict(p)
    q["w1"] = jnp.pad(p["w1"], ((0, 0), (0, pad)))
    q["b1"] = jnp.pad(p["b1"], ((0, 0), (0, pad)))
    q["w2"] = jnp.pad(p["w2"], ((0, pad), (0, 0)))
    return q


def _prep_resblock(p, wdt, pad_mult):
    # bf16 weights for the MXU, f32 biases/affine, b2+b3 folded into one bias.
    p = _pad_hidden(p, pad_mult)
    return dict(w1=p["w1"].astype(wdt), b1=p["b1"],
                w2=p["w2"].astype(wdt), w3=p["w3"].astype(wdt),
                b23=p["b2"] + p["b3"], gamma=p["gamma"], beta=p["beta"])


def _prep_resblock_split(p, n_first, wdt, pad_mult):
    # Split fc1/fc3 row-wise so concat([a, b]) @ W == a @ W[:n_first] + b @ W[n_first:]
    q = _prep_resblock(p, wdt, pad_mult)
    w1, w3 = q.pop("w1"), q.pop("w3")
    q["w1a"], q["w1b"] = w1[:n_first], w1[n_first:]
    q["w3a"], q["w3b"] = w3[:n_first], w3[n_first:]
    return q


def prepare_kernel_params(params, n_steps, n_features, d_feature_encode,
                          weight_dtype=jnp.bfloat16, pad_hidden_multiple=128):
    return {
        "feature_encoder": _prep_resblock(params["feature_encoder"], weight_dtype,
                                          pad_hidden_multiple),
        "enc_first": _prep_resblock_split(params["enc_first"], n_steps * n_features,
                                          weight_dtype, pad_hidden_multiple),
        "enc_shared": _prep_resblock(params["enc_shared"], weight_dtype,
                                     pad_hidden_multiple),
        "dec_shared": _prep_resblock(params["dec_shared"], weight_dtype,
                                     pad_hidden_multiple),
        "dec_final": _prep_resblock(params["dec_final"], weight_dtype,
                                    pad_hidden_multiple),
        "temporal_decoder": _prep_resblock_split(params["temporal_decoder"],
                                                 d_feature_encode, weight_dtype,
                                                 pad_hidden_multiple),
        "residual_w": params["residual_w"].astype(weight_dtype),
        "residual_b": params["residual_b"],
    }


# ---------------------------------------------------------------------------
# Pure-JAX reference (same math, no Pallas) for correctness check
# ---------------------------------------------------------------------------
def tide_forward_ref(X, dynamic, kp, n_layers):
    bsz, T, F = X.shape
    fe = kp["feature_encoder"]
    feat = _resblock(dynamic.reshape(bsz * T, F), fe["w1"], fe["b1"], fe["w2"],
                     fe["w3"], fe["b23"], fe["gamma"], fe["beta"])
    feat = feat.astype(fe["w2"].dtype)        # mirror the kernel's stored intermediate
    d_fe = feat.shape[-1]

    e1 = kp["enc_first"]
    hidden = _resblock_split(X.reshape(bsz, T * F), feat.reshape(bsz, T * d_fe),
                             e1["w1a"], e1["w1b"], e1["b1"], e1["w2"],
                             e1["w3a"], e1["w3b"], e1["b23"], e1["gamma"], e1["beta"])
    es, ds, df = kp["enc_shared"], kp["dec_shared"], kp["dec_final"]
    for _ in range(n_layers - 1):
        hidden = _resblock(hidden, es["w1"], es["b1"], es["w2"], es["w3"],
                           es["b23"], es["gamma"], es["beta"])
    for _ in range(n_layers - 1):
        hidden = _resblock(hidden, ds["w1"], ds["b1"], ds["w2"], ds["w3"],
                           ds["b23"], ds["gamma"], ds["beta"])
    decoded = _resblock(hidden, df["w1"], df["b1"], df["w2"], df["w3"],
                        df["b23"], df["gamma"], df["beta"])
    decoded = decoded.astype(df["w2"].dtype)  # mirror the kernel's stored intermediate

    td = kp["temporal_decoder"]
    pred = _resblock_split(feat, decoded.reshape(bsz * T, F),
                           td["w1a"], td["w1b"], td["b1"], td["w2"],
                           td["w3a"], td["w3b"], td["b23"], td["gamma"], td["beta"])
    pred = pred + _dot(X.reshape(bsz * T, F), kp["residual_w"]) + kp["residual_b"]
    return pred.reshape(bsz, T, F)


# ---------------------------------------------------------------------------
if __name__ == "__main__":
    # Small, module-consistent shapes
    n_steps = 8
    n_features = 4
    n_layers = 2
    d_hidden = 32
    d_feature_encode = 4
    d_temporal_decoder_hidden = 16
    batch = 2

    key = jax.random.PRNGKey(0)
    k_params, k_x, k_dyn = jax.random.split(key, 3)

    base_params = make_tide_params(k_params, n_steps, n_features, n_layers,
                                   d_hidden, d_feature_encode,
                                   d_temporal_decoder_hidden)
    kparams = prepare_kernel_params(base_params, n_steps, n_features,
                                    d_feature_encode, weight_dtype=jnp.bfloat16)
    kparams_f32 = prepare_kernel_params(base_params, n_steps, n_features,
                                        d_feature_encode, weight_dtype=jnp.float32)

    X = jax.random.normal(k_x, (batch, n_steps, n_features), jnp.float32)
    dynamic = jax.random.normal(k_dyn, (batch, n_steps, n_features), jnp.float32)

    out = tide_forward(X, dynamic, kparams, n_layers=n_layers)
    out = jax.block_until_ready(out)

    # Same bf16 math in plain JAX -> tight check on the Pallas implementation.
    ref_bf16 = tide_forward_ref(X, dynamic, kparams, n_layers)
    # Full f32 math -> loose check on the bf16-matmul approximation.
    ref_f32 = tide_forward_ref(X, dynamic, kparams_f32, n_layers)

    assert out.shape == (batch, n_steps, n_features)
    assert jnp.allclose(out, ref_bf16, atol=2e-2, rtol=2e-2), \
        f"max |diff| vs bf16 ref = {float(jnp.max(jnp.abs(out - ref_bf16)))}"
    assert jnp.allclose(out, ref_f32, atol=1e-1, rtol=1e-1), \
        f"max |diff| vs f32 ref = {float(jnp.max(jnp.abs(out - ref_f32)))}"

    print("KERNEL_OK")
</pallas_src>

<mosaic_0001>
module attributes {stable_mosaic.version = 11 : i64} {
  func.func @_feature_encoder_kernel(%arg0: i32, %arg1: memref<16x4xf32, #tpu.memory_space<vmem>>, %arg2: memref<4x128xbf16, #tpu.memory_space<vmem>>, %arg3: memref<1x128xf32, #tpu.memory_space<vmem>>, %arg4: memref<128x4xbf16, #tpu.memory_space<vmem>>, %arg5: memref<4x4xbf16, #tpu.memory_space<vmem>>, %arg6: memref<1x4xf32, #tpu.memory_space<vmem>>, %arg7: memref<1x4xf32, #tpu.memory_space<vmem>>, %arg8: memref<1x4xf32, #tpu.memory_space<vmem>>, %arg9: memref<16x4xbf16, #tpu.memory_space<vmem>>) attributes {dimension_semantics = [#tpu.dimension_semantics<parallel>], iteration_bounds = array<i64: 1>, scalar_prefetch = 0 : i64, scratch_operands = 0 : i64, tpu.core_type = #tpu.core_type<tc>, window_params = [{transform_indices = @transform_0, window_bounds = array<i64: 16, 4>}, {pipeline_mode = #tpu.pipeline_mode<synchronous>, transform_indices = @transform_1, window_bounds = array<i64: 4, 128>}, {pipeline_mode = #tpu.pipeline_mode<synchronous>, transform_indices = @transform_2, window_bounds = array<i64: 1, 128>}, {pipeline_mode = #tpu.pipeline_mode<synchronous>, transform_indices = @transform_3, window_bounds = array<i64: 128, 4>}, {pipeline_mode = #tpu.pipeline_mode<synchronous>, transform_indices = @transform_4, window_bounds = array<i64: 4, 4>}, {pipeline_mode = #tpu.pipeline_mode<synchronous>, transform_indices = @transform_5, window_bounds = array<i64: 1, 4>}, {pipeline_mode = #tpu.pipeline_mode<synchronous>, transform_indices = @transform_6, window_bounds = array<i64: 1, 4>}, {pipeline_mode = #tpu.pipeline_mode<synchronous>, transform_indices = @transform_7, window_bounds = array<i64: 1, 4>}, {transform_indices = @transform_8, window_bounds = array<i64: 16, 4>}]} {
    %c0 = arith.constant 0 : index
    %c0_0 = arith.constant 0 : index
    %0 = vector.load %arg1[%c0, %c0_0] : memref<16x4xf32, #tpu.memory_space<vmem>>, vector<16x4xf32>
    %c0_1 = arith.constant 0 : index
    %c0_2 = arith.constant 0 : index
    %1 = vector.load %arg2[%c0_1, %c0_2] : memref<4x128xbf16, #tpu.memory_space<vmem>>, vector<4x128xbf16>
    %c0_3 = arith.constant 0 : index
    %c0_4 = arith.constant 0 : index
    %2 = vector.load %arg3[%c0_3, %c0_4] : memref<1x128xf32, #tpu.memory_space<vmem>>, vector<1x128xf32>
    %c0_5 = arith.constant 0 : index
    %c0_6 = arith.constant 0 : index
    %3 = vector.load %arg4[%c0_5, %c0_6] : memref<128x4xbf16, #tpu.memory_space<vmem>>, vector<128x4xbf16>
    %c0_7 = arith.constant 0 : index
    %c0_8 = arith.constant 0 : index
    %4 = vector.load %arg5[%c0_7, %c0_8] : memref<4x4xbf16, #tpu.memory_space<vmem>>, vector<4x4xbf16>
    %c0_9 = arith.constant 0 : index
    %c0_10 = arith.constant 0 : index
    %5 = vector.load %arg6[%c0_9, %c0_10] : memref<1x4xf32, #tpu.memory_space<vmem>>, vector<1x4xf32>
    %c0_11 = arith.constant 0 : index
    %c0_12 = arith.constant 0 : index
    %6 = vector.load %arg7[%c0_11, %c0_12] : memref<1x4xf32, #tpu.memory_space<vmem>>, vector<1x4xf32>
    %c0_13 = arith.constant 0 : index
    %c0_14 = arith.constant 0 : index
    %7 = vector.load %arg8[%c0_13, %c0_14] : memref<1x4xf32, #tpu.memory_space<vmem>>, vector<1x4xf32>
    %8 = arith.truncf %0 : vector<16x4xf32> to vector<16x4xbf16>
    %cst = arith.constant dense<0.000000e+00> : vector<16x128xf32>
    %9 = tpu.matmul %8, %1, %cst {dimension_numbers = #tpu.dot_dimension_numbers<[1], [0], [0], [1], [0, 0, 1, 1], [], []>} : vector<16x4xbf16>, vector<4x128xbf16>, vector<16x128xf32> -> vector<16x128xf32>
    %10 = vector.broadcast %2 : vector<1x128xf32> to vector<16x128xf32>
    %11 = arith.addf %9, %10 : vector<16x128xf32>
    %cst_15 = arith.constant 0.000000e+00 : f32
    %12 = vector.broadcast %cst_15 : f32 to vector<16x128xf32>
    %13 = arith.maximumf %11, %12 : vector<16x128xf32>
    %14 = arith.truncf %13 : vector<16x128xf32> to vector<16x128xbf16>
    %cst_16 = arith.constant dense<0.000000e+00> : vector<16x4xf32>
    %15 = tpu.matmul %14, %3, %cst_16 {dimension_numbers = #tpu.dot_dimension_numbers<[1], [0], [0], [1], [0, 0, 1, 1], [], []>} : vector<16x128xbf16>, vector<128x4xbf16>, vector<16x4xf32> -> vector<16x4xf32>
    %16 = arith.truncf %0 : vector<16x4xf32> to vector<16x4xbf16>
    %cst_17 = arith.constant dense<0.000000e+00> : vector<16x4xf32>
    %17 = tpu.matmul %16, %4, %cst_17 {dimension_numbers = #tpu.dot_dimension_numbers<[1], [0], [0], [1], [0, 0, 1, 1], [], []>} : vector<16x4xbf16>, vector<4x4xbf16>, vector<16x4xf32> -> vector<16x4xf32>
    %18 = arith.addf %15, %17 : vector<16x4xf32>
    %19 = vector.broadcast %5 : vector<1x4xf32> to vector<16x4xf32>
    %20 = arith.addf %18, %19 : vector<16x4xf32>
    %cst_18 = arith.constant dense<0.000000e+00> : vector<16xf32>
    %21 = vector.multi_reduction <add>, %20, %cst_18 [1] : vector<16x4xf32> to vector<16xf32>
    %22 = vector.shape_cast %21 : vector<16xf32> to vector<16x1xf32>
    %cst_19 = arith.constant 4.000000e+00 : f32
    %23 = vector.broadcast %cst_19 : f32 to vector<16x1xf32>
    %24 = arith.divf %22, %23 : vector<16x1xf32>
    %25 = arith.mulf %20, %20 : vector<16x4xf32>
    %cst_20 = arith.constant dense<0.000000e+00> : vector<16xf32>
    %26 = vector.multi_reduction <add>, %25, %cst_20 [1] : vector<16x4xf32> to vector<16xf32>
    %27 = vector.shape_cast %26 : vector<16xf32> to vector<16x1xf32>
    %cst_21 = arith.constant 4.000000e+00 : f32
    %28 = vector.broadcast %cst_21 : f32 to vector<16x1xf32>
    %29 = arith.divf %27, %28 : vector<16x1xf32>
    %30 = arith.mulf %24, %24 : vector<16x1xf32>
    %31 = arith.subf %29, %30 : vector<16x1xf32>
    %cst_22 = arith.constant 0.000000e+00 : f32
    %32 = vector.broadcast %cst_22 : f32 to vector<16x1xf32>
    %33 = arith.maximumf %31, %32 : vector<16x1xf32>
    %34 = vector.broadcast %24 : vector<16x1xf32> to vector<16x4xf32>
    %35 = arith.subf %20, %34 : vector<16x4xf32>
    %cst_23 = arith.constant 9.99999974E-6 : f32
    %36 = vector.broadcast %cst_23 : f32 to vector<16x1xf32>
    %37 = arith.addf %33, %36 : vector<16x1xf32>
    %38 = math.rsqrt %37 : vector<16x1xf32>
    %39 = vector.broadcast %38 : vector<16x1xf32> to vector<16x4xf32>
    %40 = arith.mulf %35, %39 : vector<16x4xf32>
    %41 = vector.broadcast %6 : vector<1x4xf32> to vector<16x4xf32>
    %42 = arith.mulf %40, %41 : vector<16x4xf32>
    %43 = vector.broadcast %7 : vector<1x4xf32> to vector<16x4xf32>
    %44 = arith.addf %42, %43 : vector<16x4xf32>
    %45 = arith.truncf %44 : vector<16x4xf32> to vector<16x4xbf16>
    %c0_24 = arith.constant 0 : index
    %c0_25 = arith.constant 0 : index
    %46 = vector.load %arg9[%c0_24, %c0_25] : memref<16x4xbf16, #tpu.memory_space<vmem>>, vector<16x4xbf16>
    tpu.vector_store %arg9[%c0_24, %c0_25], %45 {strides = array<i32>} : memref<16x4xbf16, #tpu.memory_space<vmem>>, vector<16x4xbf16>,
    return
  }
  func.func @transform_0(%arg0: i32) -> (i32, i32) {
    %c0_i32 = arith.constant 0 : i32
    %c0_i32_0 = arith.constant 0 : i32
    return %arg0, %c0_i32 : i32, i32
  }
  func.func @transform_1(%arg0: i32) -> (i32, i32) {
    %c0_i32 = arith.constant 0 : i32
    %c0_i32_0 = arith.constant 0 : i32
    %c0_i32_1 = arith.constant 0 : i32
    return %c0_i32, %c0_i32_0 : i32, i32
  }
  func.func @transform_2(%arg0: i32) -> (i32, i32) {
    %c0_i32 = arith.constant 0 : i32
    %c0_i32_0 = arith.constant 0 : i32
    %c0_i32_1 = arith.constant 0 : i32
    return %c0_i32, %c0_i32_0 : i32, i32
  }
  func.func @transform_3(%arg0: i32) -> (i32, i32) {
    %c0_i32 = arith.constant 0 : i32
    %c0_i32_0 = arith.constant 0 : i32
    %c0_i32_1 = arith.constant 0 : i32
    return %c0_i32, %c0_i32_0 : i32, i32
  }
  func.func @transform_4(%arg0: i32) -> (i32, i32) {
    %c0_i32 = arith.constant 0 : i32
    %c0_i32_0 = arith.constant 0 : i32
    %c0_i32_1 = arith.constant 0 : i32
    return %c0_i32, %c0_i32_0 : i32, i32
  }
  func.func @transform_5(%arg0: i32) -> (i32, i32) {
    %c0_i32 = arith.constant 0 : i32
    %c0_i32_0 = arith.constant 0 : i32
    %c0_i32_1 = arith.constant 0 : i32
    return %c0_i32, %c0_i32_0 : i32, i32
  }
  func.func @transform_6(%arg0: i32) -> (i32, i32) {
    %c0_i32 = arith.constant 0 : i32
    %c0_i32_0 = arith.constant 0 : i32
    %c0_i32_1 = arith.constant 0 : i32
    return %c0_i32, %c0_i32_0 : i32, i32
  }
  func.func @transform_7(%arg0: i32) -> (i32, i32) {
    %c0_i32 = arith.constant 0 : i32
    %c0_i32_0 = arith.constant 0 : i32
    %c0_i32_1 = arith.constant 0 : i32
    return %c0_i32, %c0_i32_0 : i32, i32
  }
  func.func @transform_8(%arg0: i32) -> (i32, i32) {
    %c0_i32 = arith.constant 0 : i32
    %c0_i32_0 = arith.constant 0 : i32
    return %arg0, %c0_i32 : i32, i32
  }
}

module attributes {stable_mosaic.version = 11 : i64} {
  func.func @_temporal_kernel(%arg0: i32, %arg1: memref<16x4xbf16, #tpu.memory_space<vmem>>, %arg2: memref<16x4xbf16, #tpu.memory_space<vmem>>, %arg3: memref<16x4xf32, #tpu.memory_space<vmem>>, %arg4: memref<4x128xbf16, #tpu.memory_space<vmem>>, %arg5: memref<4x128xbf16, #tpu.memory_space<vmem>>, %arg6: memref<1x128xf32, #tpu.memory_space<vmem>>, %arg7: memref<128x4xbf16, #tpu.memory_space<vmem>>, %arg8: memref<4x4xbf16, #tpu.memory_space<vmem>>, %arg9: memref<4x4xbf16, #tpu.memory_space<vmem>>, %arg10: memref<1x4xf32, #tpu.memory_space<vmem>>, %arg11: memref<1x4xf32, #tpu.memory_space<vmem>>, %arg12: memref<1x4xf32, #tpu.memory_space<vmem>>, %arg13: memref<4x4xbf16, #tpu.memory_space<vmem>>, %arg14: memref<1x4xf32, #tpu.memory_space<vmem>>, %arg15: memref<16x4xf32, #tpu.memory_space<vmem>>) attributes {dimension_semantics = [#tpu.dimension_semantics<parallel>], iteration_bounds = array<i64: 1>, scalar_prefetch = 0 : i64, scratch_operands = 0 : i64, tpu.core_type = #tpu.core_type<tc>, window_params = [{transform_indices = @transform_0, window_bounds = array<i64: 16, 4>}, {transform_indices = @transform_1, window_bounds = array<i64: 16, 4>}, {transform_indices = @transform_2, window_bounds = array<i64: 16, 4>}, {pipeline_mode = #tpu.pipeline_mode<synchronous>, transform_indices = @transform_3, window_bounds = array<i64: 4, 128>}, {pipeline_mode = #tpu.pipeline_mode<synchronous>, transform_indices = @transform_4, window_bounds = array<i64: 4, 128>}, {pipeline_mode = #tpu.pipeline_mode<synchronous>, transform_indices = @transform_5, window_bounds = array<i64: 1, 128>}, {pipeline_mode = #tpu.pipeline_mode<synchronous>, transform_indices = @transform_6, window_bounds = array<i64: 128, 4>}, {pipeline_mode = #tpu.pipeline_mode<synchronous>, transform_indices = @transform_7, window_bounds = array<i64: 4, 4>}, {pipeline_mode = #tpu.pipeline_mode<synchronous>, transform_indices = @transform_8, window_bounds = array<i64: 4, 4>}, {pipeline_mode = #tpu.pipeline_mode<synchronous>, transform_indices = @transform_9, window_bounds = array<i64: 1, 4>}, {pipeline_mode = #tpu.pipeline_mode<synchronous>, transform_indices = @transform_10, window_bounds = array<i64: 1, 4>}, {pipeline_mode = #tpu.pipeline_mode<synchronous>, transform_indices = @transform_11, window_bounds = array<i64: 1, 4>}, {pipeline_mode = #tpu.pipeline_mode<synchronous>, transform_indices = @transform_12, window_bounds = array<i64: 4, 4>}, {pipeline_mode = #tpu.pipeline_mode<synchronous>, transform_indices = @transform_13, window_bounds = array<i64: 1, 4>}, {transform_indices = @transform_14, window_bounds = array<i64: 16, 4>}]} {
    %c0 = arith.constant 0 : index
    %c0_0 = arith.constant 0 : index
    %0 = vector.load %arg1[%c0, %c0_0] : memref<16x4xbf16, #tpu.memory_space<vmem>>, vector<16x4xbf16>
    %c0_1 = arith.constant 0 : index
    %c0_2 = arith.constant 0 : index
    %1 = vector.load %arg2[%c0_1, %c0_2] : memref<16x4xbf16, #tpu.memory_space<vmem>>, vector<16x4xbf16>
    %c0_3 = arith.constant 0 : index
    %c0_4 = arith.constant 0 : index
    %2 = vector.load %arg4[%c0_3, %c0_4] : memref<4x128xbf16, #tpu.memory_space<vmem>>, vector<4x128xbf16>
    %c0_5 = arith.constant 0 : index
    %c0_6 = arith.constant 0 : index
    %3 = vector.load %arg5[%c0_5, %c0_6] : memref<4x128xbf16, #tpu.memory_space<vmem>>, vector<4x128xbf16>
    %c0_7 = arith.constant 0 : index
    %c0_8 = arith.constant 0 : index
    %4 = vector.load %arg6[%c0_7, %c0_8] : memref<1x128xf32, #tpu.memory_space<vmem>>, vector<1x128xf32>
    %c0_9 = arith.constant 0 : index
    %c0_10 = arith.constant 0 : index
    %5 = vector.load %arg7[%c0_9, %c0_10] : memref<128x4xbf16, #tpu.memory_space<vmem>>, vector<128x4xbf16>
    %c0_11 = arith.constant 0 : index
    %c0_12 = arith.constant 0 : index
    %6 = vector.load %arg8[%c0_11, %c0_12] : memref<4x4xbf16, #tpu.memory_space<vmem>>, vector<4x4xbf16>
    %c0_13 = arith.constant 0 : index
    %c0_14 = arith.constant 0 : index
    %7 = vector.load %arg9[%c0_13, %c0_14] : memref<4x4xbf16, #tpu.memory_space<vmem>>, vector<4x4xbf16>
    %c0_15 = arith.constant 0 : index
    %c0_16 = arith.constant 0 : index
    %8 = vector.load %arg10[%c0_15, %c0_16] : memref<1x4xf32, #tpu.memory_space<vmem>>, vector<1x4xf32>
    %c0_17 = arith.constant 0 : index
    %c0_18 = arith.constant 0 : index
    %9 = vector.load %arg11[%c0_17, %c0_18] : memref<1x4xf32, #tpu.memory_space<vmem>>, vector<1x4xf32>
    %c0_19 = arith.constant 0 : index
    %c0_20 = arith.constant 0 : index
    %10 = vector.load %arg12[%c0_19, %c0_20] : memref<1x4xf32, #tpu.memory_space<vmem>>, vector<1x4xf32>
    %cst = arith.constant dense<0.000000e+00> : vector<16x128xf32>
    %11 = tpu.matmul %0, %2, %cst {dimension_numbers = #tpu.dot_dimension_numbers<[1], [0], [0], [1], [0, 0, 1, 1], [], []>} : vector<16x4xbf16>, vector<4x128xbf16>, vector<16x128xf32> -> vector<16x128xf32>
    %cst_21 = arith.constant dense<0.000000e+00> : vector<16x128xf32>
    %12 = tpu.matmul %1, %3, %cst_21 {dimension_numbers = #tpu.dot_dimension_numbers<[1], [0], [0], [1], [0, 0, 1, 1], [], []>} : vector<16x4xbf16>, vector<4x128xbf16>, vector<16x128xf32> -> vector<16x128xf32>
    %13 = arith.addf %11, %12 : vector<16x128xf32>
    %14 = vector.broadcast %4 : vector<1x128xf32> to vector<16x128xf32>
    %15 = arith.addf %13, %14 : vector<16x128xf32>
    %cst_22 = arith.constant 0.000000e+00 : f32
    %16 = vector.broadcast %cst_22 : f32 to vector<16x128xf32>
    %17 = arith.maximumf %15, %16 : vector<16x128xf32>
    %18 = arith.truncf %17 : vector<16x128xf32> to vector<16x128xbf16>
    %cst_23 = arith.constant dense<0.000000e+00> : vector<16x4xf32>
    %19 = tpu.matmul %18, %5, %cst_23 {dimension_numbers = #tpu.dot_dimension_numbers<[1], [0], [0], [1], [0, 0, 1, 1], [], []>} : vector<16x128xbf16>, vector<128x4xbf16>, vector<16x4xf32> -> vector<16x4xf32>
    %cst_24 = arith.constant dense<0.000000e+00> : vector<16x4xf32>
    %20 = tpu.matmul %0, %6, %cst_24 {dimension_numbers = #tpu.dot_dimension_numbers<[1], [0], [0], [1], [0, 0, 1, 1], [], []>} : vector<16x4xbf16>, vector<4x4xbf16>, vector<16x4xf32> -> vector<16x4xf32>
    %21 = arith.addf %19, %20 : vector<16x4xf32>
    %cst_25 = arith.constant dense<0.000000e+00> : vector<16x4xf32>
    %22 = tpu.matmul %1, %7, %cst_25 {dimension_numbers = #tpu.dot_dimension_numbers<[1], [0], [0], [1], [0, 0, 1, 1], [], []>} : vector<16x4xbf16>, vector<4x4xbf16>, vector<16x4xf32> -> vector<16x4xf32>
    %23 = arith.addf %21, %22 : vector<16x4xf32>
    %24 = vector.broadcast %8 : vector<1x4xf32> to vector<16x4xf32>
    %25 = arith.addf %23, %24 : vector<16x4xf32>
    %cst_26 = arith.constant dense<0.000000e+00> : vector<16xf32>
    %26 = vector.multi_reduction <add>, %25, %cst_26 [1] : vector<16x4xf32> to vector<16xf32>
    %27 = vector.shape_cast %26 : vector<16xf32> to vector<16x1xf32>
    %cst_27 = arith.constant 4.000000e+00 : f32
    %28 = vector.broadcast %cst_27 : f32 to vector<16x1xf32>
    %29 = arith.divf %27, %28 : vector<16x1xf32>
    %30 = arith.mulf %25, %25 : vector<16x4xf32>
    %cst_28 = arith.constant dense<0.000000e+00> : vector<16xf32>
    %31 = vector.multi_reduction <add>, %30, %cst_28 [1] : vector<16x4xf32> to vector<16xf32>
    %32 = vector.shape_cast %31 : vector<16xf32> to vector<16x1xf32>
    %cst_29 = arith.constant 4.000000e+00 : f32
    %33 = vector.broadcast %cst_29 : f32 to vector<16x1xf32>
    %34 = arith.divf %32, %33 : vector<16x1xf32>
    %35 = arith.mulf %29, %29 : vector<16x1xf32>
    %36 = arith.subf %34, %35 : vector<16x1xf32>
    %cst_30 = arith.constant 0.000000e+00 : f32
    %37 = vector.broadcast %cst_30 : f32 to vector<16x1xf32>
    %38 = arith.maximumf %36, %37 : vector<16x1xf32>
    %39 = vector.broadcast %29 : vector<16x1xf32> to vector<16x4xf32>
    %40 = arith.subf %25, %39 : vector<16x4xf32>
    %cst_31 = arith.constant 9.99999974E-6 : f32
    %41 = vector.broadcast %cst_31 : f32 to vector<16x1xf32>
    %42 = arith.addf %38, %41 : vector<16x1xf32>
    %43 = math.rsqrt %42 : vector<16x1xf32>
    %44 = vector.broadcast %43 : vector<16x1xf32> to vector<16x4xf32>
    %45 = arith.mulf %40, %44 : vector<16x4xf32>
    %46 = vector.broadcast %9 : vector<1x4xf32> to vector<16x4xf32>
    %47 = arith.mulf %45, %46 : vector<16x4xf32>
    %48 = vector.broadcast %10 : vector<1x4xf32> to vector<16x4xf32>
    %49 = arith.addf %47, %48 : vector<16x4xf32>
    %c0_32 = arith.constant 0 : index
    %c0_33 = arith.constant 0 : index
    %50 = vector.load %arg3[%c0_32, %c0_33] : memref<16x4xf32, #tpu.memory_space<vmem>>, vector<16x4xf32>
    %c0_34 = arith.constant 0 : index
    %c0_35 = arith.constant 0 : index
    %51 = vector.load %arg13[%c0_34, %c0_35] : memref<4x4xbf16, #tpu.memory_space<vmem>>, vector<4x4xbf16>
    %52 = arith.truncf %50 : vector<16x4xf32> to vector<16x4xbf16>
    %cst_36 = arith.constant dense<0.000000e+00> : vector<16x4xf32>
    %53 = tpu.matmul %52, %51, %cst_36 {dimension_numbers = #tpu.dot_dimension_numbers<[1], [0], [0], [1], [0, 0, 1, 1], [], []>} : vector<16x4xbf16>, vector<4x4xbf16>, vector<16x4xf32> -> vector<16x4xf32>
    %c0_37 = arith.constant 0 : index
    %c0_38 = arith.constant 0 : index
    %54 = vector.load %arg14[%c0_37, %c0_38] : memref<1x4xf32, #tpu.memory_space<vmem>>, vector<1x4xf32>
    %55 = vector.broadcast %54 : vector<1x4xf32> to vector<16x4xf32>
    %56 = arith.addf %53, %55 : vector<16x4xf32>
    %57 = arith.addf %49, %56 : vector<16x4xf32>
    %c0_39 = arith.constant 0 : index
    %c0_40 = arith.constant 0 : index
    %58 = vector.load %arg15[%c0_39, %c0_40] : memref<16x4xf32, #tpu.memory_space<vmem>>, vector<16x4xf32>
    tpu.vector_store %arg15[%c0_39, %c0_40], %57 {strides = array<i32>} : memref<16x4xf32, #tpu.memory_space<vmem>>, vector<16x4xf32>,
    return
  }
  func.func @transform_0(%arg0: i32) -> (i32, i32) {
    %c0_i32 = arith.constant 0 : i32
    %c0_i32_0 = arith.constant 0 : i32
    return %arg0, %c0_i32 : i32, i32
  }
  func.func @transform_1(%arg0: i32) -> (i32, i32) {
    %c0_i32 = arith.constant 0 : i32
    %c0_i32_0 = arith.constant 0 : i32
    return %arg0, %c0_i32 : i32, i32
  }
  func.func @transform_2(%arg0: i32) -> (i32, i32) {
    %c0_i32 = arith.constant 0 : i32
    %c0_i32_0 = arith.constant 0 : i32
    return %arg0, %c0_i32 : i32, i32
  }
  func.func @transform_3(%arg0: i32) -> (i32, i32) {
    %c0_i32 = arith.constant 0 : i32
    %c0_i32_0 = arith.constant 0 : i32
    %c0_i32_1 = arith.constant 0 : i32
    return %c0_i32, %c0_i32_0 : i32, i32
  }
  func.func @transform_4(%arg0: i32) -> (i32, i32) {
    %c0_i32 = arith.constant 0 : i32
    %c0_i32_0 = arith.constant 0 : i32
    %c0_i32_1 = arith.constant 0 : i32
    return %c0_i32, %c0_i32_0 : i32, i32
  }
  func.func @transform_5(%arg0: i32) -> (i32, i32) {
    %c0_i32 = arith.constant 0 : i32
    %c0_i32_0 = arith.constant 0 : i32
    %c0_i32_1 = arith.constant 0 : i32
    return %c0_i32, %c0_i32_0 : i32, i32
  }
  func.func @transform_6(%arg0: i32) -> (i32, i32) {
    %c0_i32 = arith.constant 0 : i32
    %c0_i32_0 = arith.constant 0 : i32
    %c0_i32_1 = arith.constant 0 : i32
    return %c0_i32, %c0_i32_0 : i32, i32
  }
  func.func @transform_7(%arg0: i32) -> (i32, i32) {
    %c0_i32 = arith.constant 0 : i32
    %c0_i32_0 = arith.constant 0 : i32
    %c0_i32_1 = arith.constant 0 : i32
    return %c0_i32, %c0_i32_0 : i32, i32
  }
  func.func @transform_8(%arg0: i32) -> (i32, i32) {
    %c0_i32 = arith.constant 0 : i32
    %c0_i32_0 = arith.constant 0 : i32
    %c0_i32_1 = arith.constant 0 : i32
    return %c0_i32, %c0_i32_0 : i32, i32
  }
  func.func @transform_9(%arg0: i32) -> (i32, i32) {
    %c0_i32 = arith.constant 0 : i32
    %c0_i32_0 = arith.constant 0 : i32
    %c0_i32_1 = arith.constant 0 : i32
    return %c0_i32, %c0_i32_0 : i32, i32
  }
  func.func @transform_10(%arg0: i32) -> (i32, i32) {
    %c0_i32 = arith.constant 0 : i32
    %c0_i32_0 = arith.constant 0 : i32
    %c0_i32_1 = arith.constant 0 : i32
    return %c0_i32, %c0_i32_0 : i32, i32
  }
  func.func @transform_11(%arg0: i32) -> (i32, i32) {
    %c0_i32 = arith.constant 0 : i32
    %c0_i32_0 = arith.constant 0 : i32
    %c0_i32_1 = arith.constant 0 : i32
    return %c0_i32, %c0_i32_0 : i32, i32
  }
  func.func @transform_12(%arg0: i32) -> (i32, i32) {
    %c0_i32 = arith.constant 0 : i32
    %c0_i32_0 = arith.constant 0 : i32
    %c0_i32_1 = arith.constant 0 : i32
    return %c0_i32, %c0_i32_0 : i32, i32
  }
  func.func @transform_13(%arg0: i32) -> (i32, i32) {
    %c0_i32 = arith.constant 0 : i32
    %c0_i32_0 = arith.constant 0 : i32
    %c0_i32_1 = arith.constant 0 : i32
    return %c0_i32, %c0_i32_0 : i32, i32
  }
  func.func @transform_14(%arg0: i32) -> (i32, i32) {
    %c0_i32 = arith.constant 0 : i32
    %c0_i32_0 = arith.constant 0 : i32
    return %arg0, %c0_i32 : i32, i32
  }
}

module attributes {stable_mosaic.version = 11 : i64} {
  func.func @_encdec_kernel(%arg0: i32, %arg1: memref<2x32xf32, #tpu.memory_space<vmem>>, %arg2: memref<2x32xbf16, #tpu.memory_space<vmem>>, %arg3: memref<32x128xbf16, #tpu.memory_space<vmem>>, %arg4: memref<32x128xbf16, #tpu.memory_space<vmem>>, %arg5: memref<1x128xf32, #tpu.memory_space<vmem>>, %arg6: memref<128x32xbf16, #tpu.memory_space<vmem>>, %arg7: memref<32x32xbf16, #tpu.memory_space<vmem>>, %arg8: memref<32x32xbf16, #tpu.memory_space<vmem>>, %arg9: memref<1x32xf32, #tpu.memory_space<vmem>>, %arg10: memref<1x32xf32, #tpu.memory_space<vmem>>, %arg11: memref<1x32xf32, #tpu.memory_space<vmem>>, %arg12: memref<32x128xbf16, #tpu.memory_space<vmem>>, %arg13: memref<1x128xf32, #tpu.memory_space<vmem>>, %arg14: memref<128x32xbf16, #tpu.memory_space<vmem>>, %arg15: memref<32x32xbf16, #tpu.memory_space<vmem>>, %arg16: memref<1x32xf32, #tpu.memory_space<vmem>>, %arg17: memref<1x32xf32, #tpu.memory_space<vmem>>, %arg18: memref<1x32xf32, #tpu.memory_space<vmem>>, %arg19: memref<32x128xbf16, #tpu.memory_space<vmem>>, %arg20: memref<1x128xf32, #tpu.memory_space<vmem>>, %arg21: memref<128x32xbf16, #tpu.memory_space<vmem>>, %arg22: memref<32x32xbf16, #tpu.memory_space<vmem>>, %arg23: memref<1x32xf32, #tpu.memory_space<vmem>>, %arg24: memref<1x32xf32, #tpu.memory_space<vmem>>, %arg25: memref<1x32xf32, #tpu.memory_space<vmem>>, %arg26: memref<32x128xbf16, #tpu.memory_space<vmem>>, %arg27: memref<1x128xf32, #tpu.memory_space<vmem>>, %arg28: memref<128x32xbf16, #tpu.memory_space<vmem>>, %arg29: memref<32x32xbf16, #tpu.memory_space<vmem>>, %arg30: memref<1x32xf32, #tpu.memory_space<vmem>>, %arg31: memref<1x32xf32, #tpu.memory_space<vmem>>, %arg32: memref<1x32xf32, #tpu.memory_space<vmem>>, %arg33: memref<2x32xbf16, #tpu.memory_space<vmem>>) attributes {dimension_semantics = [#tpu.dimension_semantics<parallel>], iteration_bounds = array<i64: 1>, scalar_prefetch = 0 : i64, scratch_operands = 0 : i64, tpu.core_type = #tpu.core_type<tc>, window_params = [{transform_indices = @transform_0, window_bounds = array<i64: 2, 32>}, {transform_indices = @transform_1, window_bounds = array<i64: 2, 32>}, {pipeline_mode = #tpu.pipeline_mode<synchronous>, transform_indices = @transform_2, window_bounds = array<i64: 32, 128>}, {pipeline_mode = #tpu.pipeline_mode<synchronous>, transform_indices = @transform_3, window_bounds = array<i64: 32, 128>}, {pipeline_mode = #tpu.pipeline_mode<synchronous>, transform_indices = @transform_4, window_bounds = array<i64: 1, 128>}, {pipeline_mode = #tpu.pipeline_mode<synchronous>, transform_indices = @transform_5, window_bounds = array<i64: 128, 32>}, {pipeline_mode = #tpu.pipeline_mode<synchronous>, transform_indices = @transform_6, window_bounds = array<i64: 32, 32>}, {pipeline_mode = #tpu.pipeline_mode<synchronous>, transform_indices = @transform_7, window_bounds = array<i64: 32, 32>}, {pipeline_mode = #tpu.pipeline_mode<synchronous>, transform_indices = @transform_8, window_bounds = array<i64: 1, 32>}, {pipeline_mode = #tpu.pipeline_mode<synchronous>, transform_indices = @transform_9, window_bounds = array<i64: 1, 32>}, {pipeline_mode = #tpu.pipeline_mode<synchronous>, transform_indices = @transform_10, window_bounds = array<i64: 1, 32>}, {pipeline_mode = #tpu.pipeline_mode<synchronous>, transform_indices = @transform_11, window_bounds = array<i64: 32, 128>}, {pipeline_mode = #tpu.pipeline_mode<synchronous>, transform_indices = @transform_12, window_bounds = array<i64: 1, 128>}, {pipeline_mode = #tpu.pipeline_mode<synchronous>, transform_indices = @transform_13, window_bounds = array<i64: 128, 32>}, {pipeline_mode = #tpu.pipeline_mode<synchronous>, transform_indices = @transform_14, window_bounds = array<i64: 32, 32>}, {pipeline_mode = #tpu.pipeline_mode<synchronous>, transform_indices = @transform_15, window_bounds = array<i64: 1, 32>}, {pipeline_mode = #tpu.pipeline_mode<synchronous>, transform_indices = @transform_16, window_bounds = array<i64: 1, 32>}, {pipeline_mode = #tpu.pipeline_mode<synchronous>, transform_indices = @transform_17, window_bounds = array<i64: 1, 32>}, {pipeline_mode = #tpu.pipeline_mode<synchronous>, transform_indices = @transform_18, window_bounds = array<i64: 32, 128>}, {pipeline_mode = #tpu.pipeline_mode<synchronous>, transform_indices = @transform_19, window_bounds = array<i64: 1, 128>}, {pipeline_mode = #tpu.pipeline_mode<synchronous>, transform_indices = @transform_20, window_bounds = array<i64: 128, 32>}, {pipeline_mode = #tpu.pipeline_mode<synchronous>, transform_indices = @transform_21, window_bounds = array<i64: 32, 32>}, {pipeline_mode = #tpu.pipeline_mode<synchronous>, transform_indices = @transform_22, window_bounds = array<i64: 1, 32>}, {pipeline_mode = #tpu.pipeline_mode<synchronous>, transform_indices = @transform_23, window_bounds = array<i64: 1, 32>}, {pipeline_mode = #tpu.pipeline_mode<synchronous>, transform_indices = @transform_24, window_bounds = array<i64: 1, 32>}, {pipeline_mode = #tpu.pipeline_mode<synchronous>, transform_indices = @transform_25, window_bounds = array<i64: 32, 128>}, {pipeline_mode = #tpu.pipeline_mode<synchronous>, transform_indices = @transform_26, window_bounds = array<i64: 1, 128>}, {pipeline_mode = #tpu.pipeline_mode<synchronous>, transform_indices = @transform_27, window_bounds = array<i64: 128, 32>}, {pipeline_mode = #tpu.pipeline_mode<synchronous>, transform_indices = @transform_28, window_bounds = array<i64: 32, 32>}, {pipeline_mode = #tpu.pipeline_mode<synchronous>, transform_indices = @transform_29, window_bounds = array<i64: 1, 32>}, {pipeline_mode = #tpu.pipeline_mode<synchronous>, transform_indices = @transform_30, window_bounds = array<i64: 1, 32>}, {pipeline_mode = #tpu.pipeline_mode<synchronous>, transform_indices = @transform_31, window_bounds = array<i64: 1, 32>}, {transform_indices = @transform_32, window_bounds = array<i64: 2, 32>}]} {
    %c0 = arith.constant 0 : index
    %c0_0 = arith.constant 0 : index
    %0 = vector.load %arg3[%c0, %c0_0] : memref<32x128xbf16, #tpu.memory_space<vmem>>, vector<32x128xbf16>
    %c0_1 = arith.constant 0 : index
    %c0_2 = arith.constant 0 : index
    %1 = vector.load %arg4[%c0_1, %c0_2] : memref<32x128xbf16, #tpu.memory_space<vmem>>, vector<32x128xbf16>
    %c0_3 = arith.constant 0 : index
    %c0_4 = arith.constant 0 : index
    %2 = vector.load %arg5[%c0_3, %c0_4] : memref<1x128xf32, #tpu.memory_space<vmem>>, vector<1x128xf32>
    %c0_5 = arith.constant 0 : index
    %c0_6 = arith.constant 0 : index
    %3 = vector.load %arg6[%c0_5, %c0_6] : memref<128x32xbf16, #tpu.memory_space<vmem>>, vector<128x32xbf16>
    %c0_7 = arith.constant 0 : index
    %c0_8 = arith.constant 0 : index
    %4 = vector.load %arg7[%c0_7, %c0_8] : memref<32x32xbf16, #tpu.memory_space<vmem>>, vector<32x32xbf16>
    %c0_9 = arith.constant 0 : index
    %c0_10 = arith.constant 0 : index
    %5 = vector.load %arg8[%c0_9, %c0_10] : memref<32x32xbf16, #tpu.memory_space<vmem>>, vector<32x32xbf16>
    %c0_11 = arith.constant 0 : index
    %c0_12 = arith.constant 0 : index
    %6 = vector.load %arg9[%c0_11, %c0_12] : memref<1x32xf32, #tpu.memory_space<vmem>>, vector<1x32xf32>
    %c0_13 = arith.constant 0 : index
    %c0_14 = arith.constant 0 : index
    %7 = vector.load %arg10[%c0_13, %c0_14] : memref<1x32xf32, #tpu.memory_space<vmem>>, vector<1x32xf32>
    %c0_15 = arith.constant 0 : index
    %c0_16 = arith.constant 0 : index
    %8 = vector.load %arg11[%c0_15, %c0_16] : memref<1x32xf32, #tpu.memory_space<vmem>>, vector<1x32xf32>
    %c0_17 = arith.constant 0 : index
    %c0_18 = arith.constant 0 : index
    %9 = vector.load %arg12[%c0_17, %c0_18] : memref<32x128xbf16, #tpu.memory_space<vmem>>, vector<32x128xbf16>
    %c0_19 = arith.constant 0 : index
    %c0_20 = arith.constant 0 : index
    %10 = vector.load %arg13[%c0_19, %c0_20] : memref<1x128xf32, #tpu.memory_space<vmem>>, vector<1x128xf32>
    %c0_21 = arith.constant 0 : index
    %c0_22 = arith.constant 0 : index
    %11 = vector.load %arg14[%c0_21, %c0_22] : memref<128x32xbf16, #tpu.memory_space<vmem>>, vector<128x32xbf16>
    %c0_23 = arith.constant 0 : index
    %c0_24 = arith.constant 0 : index
    %12 = vector.load %arg15[%c0_23, %c0_24] : memref<32x32xbf16, #tpu.memory_space<vmem>>, vector<32x32xbf16>
    %c0_25 = arith.constant 0 : index
    %c0_26 = arith.constant 0 : index
    %13 = vector.load %arg16[%c0_25, %c0_26] : memref<1x32xf32, #tpu.memory_space<vmem>>, vector<1x32xf32>
    %c0_27 = arith.constant 0 : index
    %c0_28 = arith.constant 0 : index
    %14 = vector.load %arg17[%c0_27, %c0_28] : memref<1x32xf32, #tpu.memory_space<vmem>>, vector<1x32xf32>
    %c0_29 = arith.constant 0 : index
    %c0_30 = arith.constant 0 : index
    %15 = vector.load %arg18[%c0_29, %c0_30] : memref<1x32xf32, #tpu.memory_space<vmem>>, vector<1x32xf32>
    %c0_31 = arith.constant 0 : index
    %c0_32 = arith.constant 0 : index
    %16 = vector.load %arg19[%c0_31, %c0_32] : memref<32x128xbf16, #tpu.memory_space<vmem>>, vector<32x128xbf16>
    %c0_33 = arith.constant 0 : index
    %c0_34 = arith.constant 0 : index
    %17 = vector.load %arg20[%c0_33, %c0_34] : memref<1x128xf32, #tpu.memory_space<vmem>>, vector<1x128xf32>
    %c0_35 = arith.constant 0 : index
    %c0_36 = arith.constant 0 : index
    %18 = vector.load %arg21[%c0_35, %c0_36] : memref<128x32xbf16, #tpu.memory_space<vmem>>, vector<128x32xbf16>
    %c0_37 = arith.constant 0 : index
    %c0_38 = arith.constant 0 : index
    %19 = vector.load %arg22[%c0_37, %c0_38] : memref<32x32xbf16, #tpu.memory_space<vmem>>, vector<32x32xbf16>
    %c0_39 = arith.constant 0 : index
    %c0_40 = arith.constant 0 : index
    %20 = vector.load %arg23[%c0_39, %c0_40] : memref<1x32xf32, #tpu.memory_space<vmem>>, vector<1x32xf32>
    %c0_41 = arith.constant 0 : index
    %c0_42 = arith.constant 0 : index
    %21 = vector.load %arg24[%c0_41, %c0_42] : memref<1x32xf32, #tpu.memory_space<vmem>>, vector<1x32xf32>
    %c0_43 = arith.constant 0 : index
    %c0_44 = arith.constant 0 : index
    %22 = vector.load %arg25[%c0_43, %c0_44] : memref<1x32xf32, #tpu.memory_space<vmem>>, vector<1x32xf32>
    %c0_45 = arith.constant 0 : index
    %c0_46 = arith.constant 0 : index
    %23 = vector.load %arg26[%c0_45, %c0_46] : memref<32x128xbf16, #tpu.memory_space<vmem>>, vector<32x128xbf16>
    %c0_47 = arith.constant 0 : index
    %c0_48 = arith.constant 0 : index
    %24 = vector.load %arg27[%c0_47, %c0_48] : memref<1x128xf32, #tpu.memory_space<vmem>>, vector<1x128xf32>
    %c0_49 = arith.constant 0 : index
    %c0_50 = arith.constant 0 : index
    %25 = vector.load %arg28[%c0_49, %c0_50] : memref<128x32xbf16, #tpu.memory_space<vmem>>, vector<128x32xbf16>
    %c0_51 = arith.constant 0 : index
    %c0_52 = arith.constant 0 : index
    %26 = vector.load %arg29[%c0_51, %c0_52] : memref<32x32xbf16, #tpu.memory_space<vmem>>, vector<32x32xbf16>
    %c0_53 = arith.constant 0 : index
    %c0_54 = arith.constant 0 : index
    %27 = vector.load %arg30[%c0_53, %c0_54] : memref<1x32xf32, #tpu.memory_space<vmem>>, vector<1x32xf32>
    %c0_55 = arith.constant 0 : index
    %c0_56 = arith.constant 0 : index
    %28 = vector.load %arg31[%c0_55, %c0_56] : memref<1x32xf32, #tpu.memory_space<vmem>>, vector<1x32xf32>
    %c0_57 = arith.constant 0 : index
    %c0_58 = arith.constant 0 : index
    %29 = vector.load %arg32[%c0_57, %c0_58] : memref<1x32xf32, #tpu.memory_space<vmem>>, vector<1x32xf32>
    %c0_59 = arith.constant 0 : index
    %c0_60 = arith.constant 0 : index
    %30 = vector.load %arg1[%c0_59, %c0_60] : memref<2x32xf32, #tpu.memory_space<vmem>>, vector<2x32xf32>
    %c0_61 = arith.constant 0 : index
    %c0_62 = arith.constant 0 : index
    %31 = vector.load %arg2[%c0_61, %c0_62] : memref<2x32xbf16, #tpu.memory_space<vmem>>, vector<2x32xbf16>
    %32 = arith.truncf %30 : vector<2x32xf32> to vector<2x32xbf16>
    %cst = arith.constant dense<0.000000e+00> : vector<2x128xf32>
    %33 = tpu.matmul %32, %0, %cst {dimension_numbers = #tpu.dot_dimension_numbers<[1], [0], [0], [1], [0, 0, 1, 1], [], []>} : vector<2x32xbf16>, vector<32x128xbf16>, vector<2x128xf32> -> vector<2x128xf32>
    %cst_63 = arith.constant dense<0.000000e+00> : vector<2x128xf32>
    %34 = tpu.matmul %31, %1, %cst_63 {dimension_numbers = #tpu.dot_dimension_numbers<[1], [0], [0], [1], [0, 0, 1, 1], [], []>} : vector<2x32xbf16>, vector<32x128xbf16>, vector<2x128xf32> -> vector<2x128xf32>
    %35 = arith.addf %33, %34 : vector<2x128xf32>
    %36 = vector.broadcast %2 : vector<1x128xf32> to vector<2x128xf32>
    %37 = arith.addf %35, %36 : vector<2x128xf32>
    %cst_64 = arith.constant 0.000000e+00 : f32
    %38 = vector.broadcast %cst_64 : f32 to vector<2x128xf32>
    %39 = arith.maximumf %37, %38 : vector<2x128xf32>
    %40 = arith.truncf %39 : vector<2x128xf32> to vector<2x128xbf16>
    %cst_65 = arith.constant dense<0.000000e+00> : vector<2x32xf32>
    %41 = tpu.matmul %40, %3, %cst_65 {dimension_numbers = #tpu.dot_dimension_numbers<[1], [0], [0], [1], [0, 0, 1, 1], [], []>} : vector<2x128xbf16>, vector<128x32xbf16>, vector<2x32xf32> -> vector<2x32xf32>
    %42 = arith.truncf %30 : vector<2x32xf32> to vector<2x32xbf16>
    %cst_66 = arith.constant dense<0.000000e+00> : vector<2x32xf32>
    %43 = tpu.matmul %42, %4, %cst_66 {dimension_numbers = #tpu.dot_dimension_numbers<[1], [0], [0], [1], [0, 0, 1, 1], [], []>} : vector<2x32xbf16>, vector<32x32xbf16>, vector<2x32xf32> -> vector<2x32xf32>
    %44 = arith.addf %41, %43 : vector<2x32xf32>
    %cst_67 = arith.constant dense<0.000000e+00> : vector<2x32xf32>
    %45 = tpu.matmul %31, %5, %cst_67 {dimension_numbers = #tpu.dot_dimension_numbers<[1], [0], [0], [1], [0, 0, 1, 1], [], []>} : vector<2x32xbf16>, vector<32x32xbf16>, vector<2x32xf32> -> vector<2x32xf32>
    %46 = arith.addf %44, %45 : vector<2x32xf32>
    %47 = vector.broadcast %6 : vector<1x32xf32> to vector<2x32xf32>
    %48 = arith.addf %46, %47 : vector<2x32xf32>
    %cst_68 = arith.constant dense<0.000000e+00> : vector<2xf32>
    %49 = vector.multi_reduction <add>, %48, %cst_68 [1] : vector<2x32xf32> to vector<2xf32>
    %50 = vector.shape_cast %49 : vector<2xf32> to vector<2x1xf32>
    %cst_69 = arith.constant 3.200000e+01 : f32
    %51 = vector.broadcast %cst_69 : f32 to vector<2x1xf32>
    %52 = arith.divf %50, %51 : vector<2x1xf32>
    %53 = arith.mulf %48, %48 : vector<2x32xf32>
    %cst_70 = arith.constant dense<0.000000e+00> : vector<2xf32>
    %54 = vector.multi_reduction <add>, %53, %cst_70 [1] : vector<2x32xf32> to vector<2xf32>
    %55 = vector.shape_cast %54 : vector<2xf32> to vector<2x1xf32>
    %cst_71 = arith.constant 3.200000e+01 : f32
    %56 = vector.broadcast %cst_71 : f32 to vector<2x1xf32>
    %57 = arith.divf %55, %56 : vector<2x1xf32>
    %58 = arith.mulf %52, %52 : vector<2x1xf32>
    %59 = arith.subf %57, %58 : vector<2x1xf32>
    %cst_72 = arith.constant 0.000000e+00 : f32
    %60 = vector.broadcast %cst_72 : f32 to vector<2x1xf32>
    %61 = arith.maximumf %59, %60 : vector<2x1xf32>
    %62 = vector.broadcast %52 : vector<2x1xf32> to vector<2x32xf32>
    %63 = arith.subf %48, %62 : vector<2x32xf32>
    %cst_73 = arith.constant 9.99999974E-6 : f32
    %64 = vector.broadcast %cst_73 : f32 to vector<2x1xf32>
    %65 = arith.addf %61, %64 : vector<2x1xf32>
    %66 = math.rsqrt %65 : vector<2x1xf32>
    %67 = vector.broadcast %66 : vector<2x1xf32> to vector<2x32xf32>
    %68 = arith.mulf %63, %67 : vector<2x32xf32>
    %69 = vector.broadcast %7 : vector<1x32xf32> to vector<2x32xf32>
    %70 = arith.mulf %68, %69 : vector<2x32xf32>
    %71 = vector.broadcast %8 : vector<1x32xf32> to vector<2x32xf32>
    %72 = arith.addf %70, %71 : vector<2x32xf32>
    %73 = vector.shape_cast %10 : vector<1x128xf32> to vector<1x128xf32>
    %74 = vector.broadcast %73 : vector<1x128xf32> to vector<2x128xf32>
    %75 = vector.shape_cast %13 : vector<1x32xf32> to vector<1x32xf32>
    %76 = vector.broadcast %75 : vector<1x32xf32> to vector<2x32xf32>
    %77 = vector.shape_cast %14 : vector<1x32xf32> to vector<1x32xf32>
    %78 = vector.broadcast %77 : vector<1x32xf32> to vector<2x32xf32>
    %79 = vector.shape_cast %15 : vector<1x32xf32> to vector<1x32xf32>
    %80 = vector.broadcast %79 : vector<1x32xf32> to vector<2x32xf32>
    %81 = vector.shape_cast %17 : vector<1x128xf32> to vector<1x128xf32>
    %82 = vector.broadcast %81 : vector<1x128xf32> to vector<2x128xf32>
    %83 = vector.shape_cast %20 : vector<1x32xf32> to vector<1x32xf32>
    %84 = vector.broadcast %83 : vector<1x32xf32> to vector<2x32xf32>
    %85 = vector.shape_cast %21 : vector<1x32xf32> to vector<1x32xf32>
    %86 = vector.broadcast %85 : vector<1x32xf32> to vector<2x32xf32>
    %87 = vector.shape_cast %22 : vector<1x32xf32> to vector<1x32xf32>
    %88 = vector.broadcast %87 : vector<1x32xf32> to vector<2x32xf32>
    %c0_i32 = arith.constant 0 : i32
    %89 = arith.truncf %72 : vector<2x32xf32> to vector<2x32xbf16>
    %cst_74 = arith.constant dense<0.000000e+00> : vector<2x128xf32>
    %90 = tpu.matmul %89, %9, %cst_74 {dimension_numbers = #tpu.dot_dimension_numbers<[1], [0], [0], [1], [0, 0, 1, 1], [], []>} : vector<2x32xbf16>, vector<32x128xbf16>, vector<2x128xf32> -> vector<2x128xf32>
    %91 = arith.addf %90, %74 : vector<2x128xf32>
    %cst_75 = arith.constant 0.000000e+00 : f32
    %92 = vector.broadcast %cst_75 : f32 to vector<2x128xf32>
    %93 = arith.maximumf %91, %92 : vector<2x128xf32>
    %94 = arith.truncf %93 : vector<2x128xf32> to vector<2x128xbf16>
    %cst_76 = arith.constant dense<0.000000e+00> : vector<2x32xf32>
    %95 = tpu.matmul %94, %11, %cst_76 {dimension_numbers = #tpu.dot_dimension_numbers<[1], [0], [0], [1], [0, 0, 1, 1], [], []>} : vector<2x128xbf16>, vector<128x32xbf16>, vector<2x32xf32> -> vector<2x32xf32>
    %96 = arith.truncf %72 : vector<2x32xf32> to vector<2x32xbf16>
    %cst_77 = arith.constant dense<0.000000e+00> : vector<2x32xf32>
    %97 = tpu.matmul %96, %12, %cst_77 {dimension_numbers = #tpu.dot_dimension_numbers<[1], [0], [0], [1], [0, 0, 1, 1], [], []>} : vector<2x32xbf16>, vector<32x32xbf16>, vector<2x32xf32> -> vector<2x32xf32>
    %98 = arith.addf %95, %97 : vector<2x32xf32>
    %99 = arith.addf %98, %76 : vector<2x32xf32>
    %cst_78 = arith.constant dense<0.000000e+00> : vector<2xf32>
    %100 = vector.multi_reduction <add>, %99, %cst_78 [1] : vector<2x32xf32> to vector<2xf32>
    %101 = vector.shape_cast %100 : vector<2xf32> to vector<2x1xf32>
    %cst_79 = arith.constant 3.200000e+01 : f32
    %102 = vector.broadcast %cst_79 : f32 to vector<2x1xf32>
    %103 = arith.divf %101, %102 : vector<2x1xf32>
    %104 = arith.mulf %99, %99 : vector<2x32xf32>
    %cst_80 = arith.constant dense<0.000000e+00> : vector<2xf32>
    %105 = vector.multi_reduction <add>, %104, %cst_80 [1] : vector<2x32xf32> to vector<2xf32>
    %106 = vector.shape_cast %105 : vector<2xf32> to vector<2x1xf32>
    %cst_81 = arith.constant 3.200000e+01 : f32
    %107 = vector.broadcast %cst_81 : f32 to vector<2x1xf32>
    %108 = arith.divf %106, %107 : vector<2x1xf32>
    %109 = arith.mulf %103, %103 : vector<2x1xf32>
    %110 = arith.subf %108, %109 : vector<2x1xf32>
    %cst_82 = arith.constant 0.000000e+00 : f32
    %111 = vector.broadcast %cst_82 : f32 to vector<2x1xf32>
    %112 = arith.maximumf %110, %111 : vector<2x1xf32>
    %113 = vector.broadcast %103 : vector<2x1xf32> to vector<2x32xf32>
    %114 = arith.subf %99, %113 : vector<2x32xf32>
    %cst_83 = arith.constant 9.99999974E-6 : f32
    %115 = vector.broadcast %cst_83 : f32 to vector<2x1xf32>
    %116 = arith.addf %112, %115 : vector<2x1xf32>
    %117 = math.rsqrt %116 : vector<2x1xf32>
    %118 = vector.broadcast %117 : vector<2x1xf32> to vector<2x32xf32>
    %119 = arith.mulf %114, %118 : vector<2x32xf32>
    %120 = arith.mulf %119, %78 : vector<2x32xf32>
    %121 = arith.addf %120, %80 : vector<2x32xf32>
    %c0_i32_84 = arith.constant 0 : i32
    %122 = arith.truncf %121 : vector<2x32xf32> to vector<2x32xbf16>
    %cst_85 = arith.constant dense<0.000000e+00> : vector<2x128xf32>
    %123 = tpu.matmul %122, %16, %cst_85 {dimension_numbers = #tpu.dot_dimension_numbers<[1], [0], [0], [1], [0, 0, 1, 1], [], []>} : vector<2x32xbf16>, vector<32x128xbf16>, vector<2x128xf32> -> vector<2x128xf32>
    %124 = arith.addf %123, %82 : vector<2x128xf32>
    %cst_86 = arith.constant 0.000000e+00 : f32
    %125 = vector.broadcast %cst_86 : f32 to vector<2x128xf32>
    %126 = arith.maximumf %124, %125 : vector<2x128xf32>
    %127 = arith.truncf %126 : vector<2x128xf32> to vector<2x128xbf16>
    %cst_87 = arith.constant dense<0.000000e+00> : vector<2x32xf32>
    %128 = tpu.matmul %127, %18, %cst_87 {dimension_numbers = #tpu.dot_dimension_numbers<[1], [0], [0], [1], [0, 0, 1, 1], [], []>} : vector<2x128xbf16>, vector<128x32xbf16>, vector<2x32xf32> -> vector<2x32xf32>
    %129 = arith.truncf %121 : vector<2x32xf32> to vector<2x32xbf16>
    %cst_88 = arith.constant dense<0.000000e+00> : vector<2x32xf32>
    %130 = tpu.matmul %129, %19, %cst_88 {dimension_numbers = #tpu.dot_dimension_numbers<[1], [0], [0], [1], [0, 0, 1, 1], [], []>} : vector<2x32xbf16>, vector<32x32xbf16>, vector<2x32xf32> -> vector<2x32xf32>
    %131 = arith.addf %128, %130 : vector<2x32xf32>
    %132 = arith.addf %131, %84 : vector<2x32xf32>
    %cst_89 = arith.constant dense<0.000000e+00> : vector<2xf32>
    %133 = vector.multi_reduction <add>, %132, %cst_89 [1] : vector<2x32xf32> to vector<2xf32>
    %134 = vector.shape_cast %133 : vector<2xf32> to vector<2x1xf32>
    %cst_90 = arith.constant 3.200000e+01 : f32
    %135 = vector.broadcast %cst_90 : f32 to vector<2x1xf32>
    %136 = arith.divf %134, %135 : vector<2x1xf32>
    %137 = arith.mulf %132, %132 : vector<2x32xf32>
    %cst_91 = arith.constant dense<0.000000e+00> : vector<2xf32>
    %138 = vector.multi_reduction <add>, %137, %cst_91 [1] : vector<2x32xf32> to vector<2xf32>
    %139 = vector.shape_cast %138 : vector<2xf32> to vector<2x1xf32>
    %cst_92 = arith.constant 3.200000e+01 : f32
    %140 = vector.broadcast %cst_92 : f32 to vector<2x1xf32>
    %141 = arith.divf %139, %140 : vector<2x1xf32>
    %142 = arith.mulf %136, %136 : vector<2x1xf32>
    %143 = arith.subf %141, %142 : vector<2x1xf32>
    %cst_93 = arith.constant 0.000000e+00 : f32
    %144 = vector.broadcast %cst_93 : f32 to vector<2x1xf32>
    %145 = arith.maximumf %143, %144 : vector<2x1xf32>
    %146 = vector.broadcast %136 : vector<2x1xf32> to vector<2x32xf32>
    %147 = arith.subf %132, %146 : vector<2x32xf32>
    %cst_94 = arith.constant 9.99999974E-6 : f32
    %148 = vector.broadcast %cst_94 : f32 to vector<2x1xf32>
    %149 = arith.addf %145, %148 : vector<2x1xf32>
    %150 = math.rsqrt %149 : vector<2x1xf32>
    %151 = vector.broadcast %150 : vector<2x1xf32> to vector<2x32xf32>
    %152 = arith.mulf %147, %151 : vector<2x32xf32>
    %153 = arith.mulf %152, %86 : vector<2x32xf32>
    %154 = arith.addf %153, %88 : vector<2x32xf32>
    %155 = arith.truncf %154 : vector<2x32xf32> to vector<2x32xbf16>
    %cst_95 = arith.constant dense<0.000000e+00> : vector<2x128xf32>
    %156 = tpu.matmul %155, %23, %cst_95 {dimension_numbers = #tpu.dot_dimension_numbers<[1], [0], [0], [1], [0, 0, 1, 1], [], []>} : vector<2x32xbf16>, vector<32x128xbf16>, vector<2x128xf32> -> vector<2x128xf32>
    %157 = vector.broadcast %24 : vector<1x128xf32> to vector<2x128xf32>
    %158 = arith.addf %156, %157 : vector<2x128xf32>
    %cst_96 = arith.constant 0.000000e+00 : f32
    %159 = vector.broadcast %cst_96 : f32 to vector<2x128xf32>
    %160 = arith.maximumf %158, %159 : vector<2x128xf32>
    %161 = arith.truncf %160 : vector<2x128xf32> to vector<2x128xbf16>
    %cst_97 = arith.constant dense<0.000000e+00> : vector<2x32xf32>
    %162 = tpu.matmul %161, %25, %cst_97 {dimension_numbers = #tpu.dot_dimension_numbers<[1], [0], [0], [1], [0, 0, 1, 1], [], []>} : vector<2x128xbf16>, vector<128x32xbf16>, vector<2x32xf32> -> vector<2x32xf32>
    %163 = arith.truncf %154 : vector<2x32xf32> to vector<2x32xbf16>
    %cst_98 = arith.constant dense<0.000000e+00> : vector<2x32xf32>
    %164 = tpu.matmul %163, %26, %cst_98 {dimension_numbers = #tpu.dot_dimension_numbers<[1], [0], [0], [1], [0, 0, 1, 1], [], []>} : vector<2x32xbf16>, vector<32x32xbf16>, vector<2x32xf32> -> vector<2x32xf32>
    %165 = arith.addf %162, %164 : vector<2x32xf32>
    %166 = vector.broadcast %27 : vector<1x32xf32> to vector<2x32xf32>
    %167 = arith.addf %165, %166 : vector<2x32xf32>
    %cst_99 = arith.constant dense<0.000000e+00> : vector<2xf32>
    %168 = vector.multi_reduction <add>, %167, %cst_99 [1] : vector<2x32xf32> to vector<2xf32>
    %169 = vector.shape_cast %168 : vector<2xf32> to vector<2x1xf32>
    %cst_100 = arith.constant 3.200000e+01 : f32
    %170 = vector.broadcast %cst_100 : f32 to vector<2x1xf32>
    %171 = arith.divf %169, %170 : vector<2x1xf32>
    %172 = arith.mulf %167, %167 : vector<2x32xf32>
    %cst_101 = arith.constant dense<0.000000e+00> : vector<2xf32>
    %173 = vector.multi_reduction <add>, %172, %cst_101 [1] : vector<2x32xf32> to vector<2xf32>
    %174 = vector.shape_cast %173 : vector<2xf32> to vector<2x1xf32>
    %cst_102 = arith.constant 3.200000e+01 : f32
    %175 = vector.broadcast %cst_102 : f32 to vector<2x1xf32>
    %176 = arith.divf %174, %175 : vector<2x1xf32>
    %177 = arith.mulf %171, %171 : vector<2x1xf32>
    %178 = arith.subf %176, %177 : vector<2x1xf32>
    %cst_103 = arith.constant 0.000000e+00 : f32
    %179 = vector.broadcast %cst_103 : f32 to vector<2x1xf32>
    %180 = arith.maximumf %178, %179 : vector<2x1xf32>
    %181 = vector.broadcast %171 : vector<2x1xf32> to vector<2x32xf32>
    %182 = arith.subf %167, %181 : vector<2x32xf32>
    %cst_104 = arith.constant 9.99999974E-6 : f32
    %183 = vector.broadcast %cst_104 : f32 to vector<2x1xf32>
    %184 = arith.addf %180, %183 : vector<2x1xf32>
    %185 = math.rsqrt %184 : vector<2x1xf32>
    %186 = vector.broadcast %185 : vector<2x1xf32> to vector<2x32xf32>
    %187 = arith.mulf %182, %186 : vector<2x32xf32>
    %188 = vector.broadcast %28 : vector<1x32xf32> to vector<2x32xf32>
    %189 = arith.mulf %187, %188 : vector<2x32xf32>
    %190 = vector.broadcast %29 : vector<1x32xf32> to vector<2x32xf32>
    %191 = arith.addf %189, %190 : vector<2x32xf32>
    %192 = arith.truncf %191 : vector<2x32xf32> to vector<2x32xbf16>
    %c0_105 = arith.constant 0 : index
    %c0_106 = arith.constant 0 : index
    %193 = vector.load %arg33[%c0_105, %c0_106] : memref<2x32xbf16, #tpu.memory_space<vmem>>, vector<2x32xbf16>
    tpu.vector_store %arg33[%c0_105, %c0_106], %192 {strides = array<i32>} : memref<2x32xbf16, #tpu.memory_space<vmem>>, vector<2x32xbf16>,
    return
  }
  func.func @transform_0(%arg0: i32) -> (i32, i32) {
    %c0_i32 = arith.constant 0 : i32
    %c0_i32_0 = arith.constant 0 : i32
    return %arg0, %c0_i32 : i32, i32
  }
  func.func @transform_1(%arg0: i32) -> (i32, i32) {
    %c0_i32 = arith.constant 0 : i32
    %c0_i32_0 = arith.constant 0 : i32
    return %arg0, %c0_i32 : i32, i32
  }
  func.func @transform_2(%arg0: i32) -> (i32, i32) {
    %c0_i32 = arith.constant 0 : i32
    %c0_i32_0 = arith.constant 0 : i32
    %c0_i32_1 = arith.constant 0 : i32
    return %c0_i32, %c0_i32_0 : i32, i32
  }
  func.func @transform_3(%arg0: i32) -> (i32, i32) {
    %c0_i32 = arith.constant 0 : i32
    %c0_i32_0 = arith.constant 0 : i32
    %c0_i32_1 = arith.constant 0 : i32
    return %c0_i32, %c0_i32_0 : i32, i32
  }
  func.func @transform_4(%arg0: i32) -> (i32, i32) {
    %c0_i32 = arith.constant 0 : i32
    %c0_i32_0 = arith.constant 0 : i32
    %c0_i32_1 = arith.constant 0 : i32
    return %c0_i32, %c0_i32_0 : i32, i32
  }
  func.func @transform_5(%arg0: i32) -> (i32, i32) {
    %c0_i32 = arith.constant 0 : i32
    %c0_i32_0 = arith.constant 0 : i32
    %c0_i32_1 = arith.constant 0 : i32
    return %c0_i32, %c0_i32_0 : i32, i32
  }
  func.func @transform_6(%arg0: i32) -> (i32, i32) {
    %c0_i32 = arith.constant 0 : i32
    %c0_i32_0 = arith.constant 0 : i32
    %c0_i32_1 = arith.constant 0 : i32
    return %c0_i32, %c0_i32_0 : i32, i32
  }
  func.func @transform_7(%arg0: i32) -> (i32, i32) {
    %c0_i32 = arith.constant 0 : i32
    %c0_i32_0 = arith.constant 0 : i32
    %c0_i32_1 = arith.constant 0 : i32
    return %c0_i32, %c0_i32_0 : i32, i32
  }
  func.func @transform_8(%arg0: i32) -> (i32, i32) {
    %c0_i32 = arith.constant 0 : i32
    %c0_i32_0 = arith.constant 0 : i32
    %c0_i32_1 = arith.constant 0 : i32
    return %c0_i32, %c0_i32_0 : i32, i32
  }
  func.func @transform_9(%arg0: i32) -> (i32, i32) {
    %c0_i32 = arith.constant 0 : i32
    %c0_i32_0 = arith.constant 0 : i32
    %c0_i32_1 = arith.constant 0 : i32
    return %c0_i32, %c0_i32_0 : i32, i32
  }
  func.func @transform_10(%arg0: i32) -> (i32, i32) {
    %c0_i32 = arith.constant 0 : i32
    %c0_i32_0 = arith.constant 0 : i32
    %c0_i32_1 = arith.constant 0 : i32
    return %c0_i32, %c0_i32_0 : i32, i32
  }
  func.func @transform_11(%arg0: i32) -> (i32, i32) {
    %c0_i32 = arith.constant 0 : i32
    %c0_i32_0 = arith.constant 0 : i32
    %c0_i32_1 = arith.constant 0 : i32
    return %c0_i32, %c0_i32_0 : i32, i32
  }
  func.func @transform_12(%arg0: i32) -> (i32, i32) {
    %c0_i32 = arith.constant 0 : i32
    %c0_i32_0 = arith.constant 0 : i32
    %c0_i32_1 = arith.constant 0 : i32
    return %c0_i32, %c0_i32_0 : i32, i32
  }
  func.func @transform_13(%arg0: i32) -> (i32, i32) {
    %c0_i32 = arith.constant 0 : i32
    %c0_i32_0 = arith.constant 0 : i32
    %c0_i32_1 = arith.constant 0 : i32
    return %c0_i32, %c0_i32_0 : i32, i32
  }
  func.func @transform_14(%arg0: i32) -> (i32, i32) {
    %c0_i32 = arith.constant 0 : i32
    %c0_i32_0 = arith.constant 0 : i32
    %c0_i32_1 = arith.constant 0 : i32
    return %c0_i32, %c0_i32_0 : i32, i32
  }
  func.func @transform_15(%arg0: i32) -> (i32, i32) {
    %c0_i32 = arith.constant 0 : i32
    %c0_i32_0 = arith.constant 0 : i32
    %c0_i32_1 = arith.constant 0 : i32
    return %c0_i32, %c0_i32_0 : i32, i32
  }
  func.func @transform_16(%arg0: i32) -> (i32, i32) {
    %c0_i32 = arith.constant 0 : i32
    %c0_i32_0 = arith.constant 0 : i32
    %c0_i32_1 = arith.constant 0 : i32
    return %c0_i32, %c0_i32_0 : i32, i32
  }
  func.func @transform_17(%arg0: i32) -> (i32, i32) {
    %c0_i32 = arith.constant 0 : i32
    %c0_i32_0 = arith.constant 0 : i32
    %c0_i32_1 = arith.constant 0 : i32
    return %c0_i32, %c0_i32_0 : i32, i32
  }
  func.func @transform_18(%arg0: i32) -> (i32, i32) {
    %c0_i32 = arith.constant 0 : i32
    %c0_i32_0 = arith.constant 0 : i32
    %c0_i32_1 = arith.constant 0 : i32
    return %c0_i32, %c0_i32_0 : i32, i32
  }
  func.func @transform_19(%arg0: i32) -> (i32, i32) {
    %c0_i32 = arith.constant 0 : i32
    %c0_i32_0 = arith.constant 0 : i32
    %c0_i32_1 = arith.constant 0 : i32
    return %c0_i32, %c0_i32_0 : i32, i32
  }
  func.func @transform_20(%arg0: i32) -> (i32, i32) {
    %c0_i32 = arith.constant 0 : i32
    %c0_i32_0 = arith.constant 0 : i32
    %c0_i32_1 = arith.constant 0 : i32
    return %c0_i32, %c0_i32_0 : i32, i32
  }
  func.func @transform_21(%arg0: i32) -> (i32, i32) {
    %c0_i32 = arith.constant 0 : i32
    %c0_i32_0 = arith.constant 0 : i32
    %c0_i32_1 = arith.constant 0 : i32
    return %c0_i32, %c0_i32_0 : i32, i32
  }
  func.func @transform_22(%arg0: i32) -> (i32, i32) {
    %c0_i32 = arith.constant 0 : i32
    %c0_i32_0 = arith.constant 0 : i32
    %c0_i32_1 = arith.constant 0 : i32
    return %c0_i32, %c0_i32_0 : i32, i32
  }
  func.func @transform_23(%arg0: i32) -> (i32, i32) {
    %c0_i32 = arith.constant 0 : i32
    %c0_i32_0 = arith.constant 0 : i32
    %c0_i32_1 = arith.constant 0 : i32
    return %c0_i32, %c0_i32_0 : i32, i32
  }
  func.func @transform_24(%arg0: i32) -> (i32, i32) {
    %c0_i32 = arith.constant 0 : i32
    %c0_i32_0 = arith.constant 0 : i32
    %c0_i32_1 = arith.constant 0 : i32
    return %c0_i32, %c0_i32_0 : i32, i32
  }
  func.func @transform_25(%arg0: i32) -> (i32, i32) {
    %c0_i32 = arith.constant 0 : i32
    %c0_i32_0 = arith.constant 0 : i32
    %c0_i32_1 = arith.constant 0 : i32
    return %c0_i32, %c0_i32_0 : i32, i32
  }
  func.func @transform_26(%arg0: i32) -> (i32, i32) {
    %c0_i32 = arith.constant 0 : i32
    %c0_i32_0 = arith.constant 0 : i32
    %c0_i32_1 = arith.constant 0 : i32
    return %c0_i32, %c0_i32_0 : i32, i32
  }
  func.func @transform_27(%arg0: i32) -> (i32, i32) {
    %c0_i32 = arith.constant 0 : i32
    %c0_i32_0 = arith.constant 0 : i32
    %c0_i32_1 = arith.constant 0 : i32
    return %c0_i32, %c0_i32_0 : i32, i32
  }
  func.func @transform_28(%arg0: i32) -> (i32, i32) {
    %c0_i32 = arith.constant 0 : i32
    %c0_i32_0 = arith.constant 0 : i32
    %c0_i32_1 = arith.constant 0 : i32
    return %c0_i32, %c0_i32_0 : i32, i32
  }
  func.func @transform_29(%arg0: i32) -> (i32, i32) {
    %c0_i32 = arith.constant 0 : i32
    %c0_i32_0 = arith.constant 0 : i32
    %c0_i32_1 = arith.constant 0 : i32
    return %c0_i32, %c0_i32_0 : i32, i32
  }
  func.func @transform_30(%arg0: i32) -> (i32, i32) {
    %c0_i32 = arith.constant 0 : i32
    %c0_i32_0 = arith.constant 0 : i32
    %c0_i32_1 = arith.constant 0 : i32
    return %c0_i32, %c0_i32_0 : i32, i32
  }
  func.func @transform_31(%arg0: i32) -> (i32, i32) {
    %c0_i32 = arith.constant 0 : i32
    %c0_i32_0 = arith.constant 0 : i32
    %c0_i32_1 = arith.constant 0 : i32
    return %c0_i32, %c0_i32_0 : i32, i32
  }
  func.func @transform_32(%arg0: i32) -> (i32, i32) {
    %c0_i32 = arith.constant 0 : i32
    %c0_i32_0 = arith.constant 0 : i32
    return %arg0, %c0_i32 : i32, i32
  }
}

</mosaic_0001>

<bundles_post_ra>
// kernel: tide_forward.3
= control target key start
LH: loop header
LB: loop body
LE: loop exit
PB: predicated region body
PF: predicated region fallthrough
CT: control target
= control target key end

     0   :  { %vm65_vm0 = vcmask 1041408   ;;  %v395_v0 = vmov 0.0   ;;  %vm396_vm1 = vmmov 0   ;;  %vm61_vm2 = vcmask 31744   ;;  %s507_s1 = inlined_call_operand.vmem [shape: bf16[4,128], index: 1, kind: input, shape index: {}]   ;;  %s508_s4 = inlined_call_operand.vmem [shape: bf16[4,4], index: 4, kind: input, shape index: {}]   ;;  %s509_s0 = inlined_call_operand.vmem [shape: f32[16,4], index: 0, kind: input, shape index: {}]   ;;  %s510_s3 = inlined_call_operand.vmem [shape: bf16[128,4], index: 3, kind: input, shape index: {}]   ;;  %s511_s2 = inlined_call_operand.vmem [shape: f32[1,128], index: 2, kind: input, shape index: {}]   ;;  %s512_s5 = inlined_call_operand.vmem [shape: f32[1,4], index: 5, kind: input, shape index: {}]   ;;  %s513_s6 = inlined_call_operand.vmem [shape: f32[1,4], index: 6, kind: input, shape index: {}]   ;;  %s514_s7 = inlined_call_operand.vmem [shape: f32[1,4], index: 7, kind: input, shape index: {}]   ;;  %s515_s8 = inlined_call_operand.vmem [shape: bf16[16,4], index: 8, kind: output, shape index: {}]  }
   0x1   :  { %349 = vmatprep.subr.bf16.mxu1 %v395_v0  ;;  %v32_v1 = vld [vmem:[%s507_s1] sm:$0x3]  ;;  %351 = vmatprep.mubr.msk.bf16.mxu1 %vm396_vm1, %v395_v0  ;;  %v31_v5 = vld [vmem:[%s509_s0 + $0x8] sm:$0xff]  ;;  %v385_v10 = vld [vmem:[%s510_s3 + $0x10] sm:$0xff]   ;;  %vm311_vm3 = vcmask 27648  }
   0x2   :  { %v50_v2 = vld [vmem:[%s508_s4] sm:$0x3]  ;;  %v67_v4 = vsel %vm65_vm0, %v32_v1, 0  ;;  %361 = vmatprep.subr.bf16.mxu0 %v395_v0  ;;  %377 = vmatprep.mubr.msk.bf16.mxu0 %vm396_vm1, %v395_v0  ;;  %v384_v9 = vld [vmem:[%s510_s3 + $0x8] sm:$0xff]   ;;  %v386_v11 = vld [vmem:[%s510_s3 + $0x18] sm:$0xff]  }
   0x3   :  { %v30_v3 = vld [vmem:[%s509_s0] sm:$0xff]  ;;  %350 = vmatpush3.bf16.msra.mxu1 %v67_v4  ;;  %v114_v8 = vsel %vm65_vm0, %v50_v2, 0  ;;  %v388_v13 = vld [vmem:[%s510_s3 + $0x28] sm:$0xff]   ;;  %v389_v14 = vld [vmem:[%s510_s3 + $0x30] sm:$0xff]  }
   0x4   :  { %v383_v6 = vld [vmem:[%s510_s3] sm:$0xff]   ;;  %v54_v7 = vpack.c.bf16 %v31_v5, %v30_v3  ;;  %355 = vmatprep.subr.bf16.mxu1 %v395_v0  ;;  %v390_v15 = vld [vmem:[%s510_s3 + $0x38] sm:$0xff]  }
   0x5   :  { %362 = vmatpush3.bf16.msra.mxu0 %v383_v6  ;;  %v387_v12 = vld [vmem:[%s510_s3 + $0x20] sm:$0xff]  }
   0x6   :  { %363 = vmatprep.subr.bf16.mxu0 %v395_v0  ;;  %352 = vmatmul.mubr.msk.bf16.vlgmr.msra.gmra.mrb[0].mxu1 %vm61_vm2, %v54_v7  ;;  %v318_v16 = vld [vmem:[%s511_s2] ss:$0 sm:$0xff] }
   0x7   :  { %356 = vmatpush3.bf16.msra.mxu1 %v114_v8  ;;  %357 = vmatprep.mubr.msk.bf16.mxu1 %vm396_vm1, %v395_v0  ;;  %v329_v30 = vld [vmem:[%s512_s5] ss:$0 sm:$0xff] }
   0x8   :  { %v330_v63 = vld [vmem:[%s513_s6] ss:$0 sm:$0xff] }
   0x9   :  { %364 = vmatpush3.bf16.msra.mxu0 %v384_v9  ;;  %v331_v1 = vld [vmem:[%s514_s7] ss:$0 sm:$0xff] }
   0xa   :  { %365 = vmatprep.subr.bf16.mxu0 %v395_v0 }
   0xd   :  { %366 = vmatpush3.bf16.msra.mxu0 %v385_v10 }
   0xe   :  { %367 = vmatprep.subr.bf16.mxu0 %v395_v0  ;;  %358 = vmatmul.mubr.msk.bf16.vlgmr.msra.gmra.mrb[4].mxu1 %vm61_vm2, %v54_v7 }
  0x11   :  { %368 = vmatpush3.bf16.msra.mxu0 %v386_v11 }
  0x12   :  { %369 = vmatprep.subr.bf16.mxu0 %v395_v0 }
  0x15   :  { %370 = vmatpush3.bf16.msra.mxu0 %v387_v12 }
  0x16   :  { %371 = vmatprep.subr.bf16.mxu0 %v395_v0 }
  0x19   :  { %372 = vmatpush3.bf16.msra.mxu0 %v388_v13 }
  0x1a   :  { %373 = vmatprep.subr.bf16.mxu0 %v395_v0 }
  0x1d   :  { %374 = vmatpush3.bf16.msra.mxu0 %v389_v14 }
  0x1e   :  { %375 = vmatprep.subr.bf16.mxu0 %v395_v0 }
  0x21   :  { %376 = vmatpush3.bf16.msra.mxu0 %v390_v15 }
  0xd9   :  { %v103_v17 = vpop.f32.mrb[0].mxu1 }
  0xda   :  { %v104_v18 = vadd.f32 %v318_v16, %v103_v17  ;;  %v353_v19 = vpop.f32.mrb[1].mxu1 }
  0xdb   :  { %v106_v20 = vpop.f32.mrb[2].mxu1 }
  0xdc   :  { %v107_v21 = vadd.f32 %v318_v16, %v106_v20  ;;  %v354_v22 = vpop.f32.mrb[3].mxu1  ;;  %v110_v23 = vmax.f32 %v104_v18, 0.0 }
  0xde   :  { %v111_v24 = vmax.f32 %v107_v21, 0.0 }
  0xe0   :  { %v112_v25 = vpack.c.bf16 %v111_v24, %v110_v23 }
  0xe1   :  { %v150_v26 = vpop.f32.mrb[4].mxu1 }
  0xe2   :  { %378 = vmatmul.mubr.bf16.vlgmr.msra.gmra.mrb[0].mxu0 %v112_v25  ;;  %v359_v27 = vpop.f32.mrb[5].mxu1 }
  0xe3   :  { %v153_v28 = vpop.f32.mrb[6].mxu1 }
  0xe4   :  { %v360_v29 = vpop.f32.mrb[7].mxu1 }
 0x1b5   :  { %v239_v31 = vpop.f32.mrb[0].mxu0 }
 0x1b6   :  { %v240_v32 = vadd.f32 %v239_v31, %v150_v26  ;;  %v379_v33 = vpop.f32.mrb[1].mxu0 }
 0x1b7   :  { %v242_v34 = vpop.f32.mrb[2].mxu0 }
 0x1b8   :  { %v252_v35 = vadd.f32 %v329_v30, %v240_v32  ;;  %v243_v36 = vadd.f32 %v242_v34, %v153_v28  ;;  %v380_v37 = vpop.f32.mrb[3].mxu0 }
 0x1ba   :  { %v253_v38 = vadd.f32 %v329_v30, %v243_v36  ;;  %v254_v39 = vsel %vm61_vm2, %v252_v35, 0.0  ;;  %v263_v40 = vmul.f32 %v252_v35, %v252_v35 }
 0x1bb   :  { %255 = vadd.xlane.f32.xlu0 %v254_v39 }
 0x1bc   :  { %v265_v41 = vsel %vm61_vm2, %v263_v40, 0.0  ;;  %v264_v42 = vmul.f32 %v253_v38, %v253_v38  ;;  %v257_v43 = vsel %vm61_vm2, %v253_v38, 0.0 }
 0x1bd   :  { %266 = vadd.xlane.f32.xlu1 %v265_v41 }
 0x1be   :  { %v268_v44 = vsel %vm61_vm2, %v264_v42, 0.0 }
 0x1bf   :  { %258 = vadd.xlane.f32.xlu0 %v257_v43 }
 0x1c1   :  { %269 = vadd.xlane.f32.xlu1 %v268_v44 }
 0x248   :  { %v256_v45 = vpop.xlane.xlu0 %255 }
 0x249   :  { %v261_v46 = vmul.f32 0.25, %v256_v45 }
 0x24a   :  { %v267_v47 = vpop.xlane.xlu1 %266 }
 0x24b   :  { %v273_v48 = vmul.f32 %v261_v46, %v261_v46  ;;  %v271_v49 = vmul.f32 0.25, %v267_v47  ;;  %v279_v61 = vsub.f32 %v252_v35, %v261_v46 }
 0x24c   :  { %v259_v50 = vpop.xlane.xlu0 %258 }
 0x24d   :  { %v275_v51 = vsub.f32 %v271_v49, %v273_v48  ;;  %v262_v52 = vmul.f32 0.25, %v259_v50 }
 0x24e   :  { %v270_v53 = vpop.xlane.xlu1 %269 }
 0x24f   :  { %v277_v54 = vmax.f32 %v275_v51, 0.0  ;;  %v274_v55 = vmul.f32 %v262_v52, %v262_v52  ;;  %v272_v56 = vmul.f32 0.25, %v270_v53  ;;  %v280_v3 = vsub.f32 %v253_v38, %v262_v52 }
 0x251   :  { %v281_v57 = vadd.f32 1e-05, %v277_v54  ;;  %v276_v58 = vsub.f32 %v272_v56, %v274_v55 }
 0x253   :  { %391 = vrsqrt.f32 %v281_v57  ;;  %v278_v59 = vmax.f32 %v276_v58, 0.0 }
 0x255   :  { %v282_v60 = vadd.f32 1e-05, %v278_v59 }
 0x257   :  { %393 = vrsqrt.f32 %v282_v60 }
 0x25d   :  { %v392_v62 = vpop.eup %391 }
 0x25e   :  { %v285_v0 = vmul.f32 %v392_v62, %v279_v61 }
 0x260   :  { %v293_v2 = vmul.f32 %v330_v63, %v285_v0 }
 0x261   :  { %v394_v4 = vpop.eup %393 }
 0x262   :  { %v301_v5 = vadd.f32 %v331_v1, %v293_v2  ;;  %v286_v6 = vmul.f32 %v394_v4, %v280_v3 }
 0x264   :  { %v334_v7 = vpack.c.bf16 %v301_v5, %v301_v5  ;;  %v294_v8 = vmul.f32 %v330_v63, %v286_v6 }
 0x266   :  { %312 = vst.msk [vmem:[%s515_s8] sm:$0xf] %vm311_vm3, %v334_v7  ;;  %v302_v9 = vadd.f32 %v331_v1, %v294_v8 }
 0x268   :  { %v335_v10 = vpack.c.bf16 %v302_v9, %v302_v9 }
 0x26a   :  { %313 = vst.msk [vmem:[%s515_s8 + $0x4] sm:$0xf] %vm311_vm3, %v335_v10 }

// kernel: tide_forward.5
= control target key start
LH: loop header
LB: loop body
LE: loop exit
PB: predicated region body
PF: predicated region fallthrough
CT: control target
= control target key end

     0   :  { %vm85_vm0 = vcmask 1041408   ;;  %vm81_vm1 = vcmask 31744   ;;  %v600_v0 = vmov 0.0   ;;  %vm601_vm2 = vmmov 0   ;;  %s771_s4 = inlined_call_operand.vmem [shape: bf16[4,128], index: 4, kind: input, shape index: {}]   ;;  %s772_s3 = inlined_call_operand.vmem [shape: bf16[4,128], index: 3, kind: input, shape index: {}]   ;;  %s773_s1 = inlined_call_operand.vmem [shape: bf16[16,4], index: 1, kind: input, shape index: {}]   ;;  %s774_s0 = inlined_call_operand.vmem [shape: bf16[16,4], index: 0, kind: input, shape index: {}]   ;;  %s775_s6 = inlined_call_operand.vmem [shape: bf16[128,4], index: 6, kind: input, shape index: {}]   ;;  %s776_s7 = inlined_call_operand.vmem [shape: bf16[4,4], index: 7, kind: input, shape index: {}]   ;;  %s777_s8 = inlined_call_operand.vmem [shape: bf16[4,4], index: 8, kind: input, shape index: {}]   ;;  %s778_s12 = inlined_call_operand.vmem [shape: bf16[4,4], index: 12, kind: input, shape index: {}]   ;;  %s779_s2 = inlined_call_operand.vmem [shape: f32[16,4], index: 2, kind: input, shape index: {}]   ;;  %s780_s5 = inlined_call_operand.vmem [shape: f32[1,128], index: 5, kind: input, shape index: {}]   ;;  %s781_s9 = inlined_call_operand.vmem [shape: f32[1,4], index: 9, kind: input, shape index: {}]   ;;  %s782_s10 = inlined_call_operand.vmem [shape: f32[1,4], index: 10, kind: input, shape index: {}]   ;;  %s783_s13 = inlined_call_operand.vmem [shape: f32[1,4], index: 13, kind: input, shape index: {}]   ;;  %s784_s11 = inlined_call_operand.vmem [shape: f32[1,4], index: 11, kind: input, shape index: {}]   ;;  %s785_s14 = inlined_call_operand.vmem [shape: f32[16,4], index: 14, kind: output, shape index: {}]  }
   0x1   :  { %534 = vmatprep.subr.bf16.mxu0 %v600_v0  ;;  %540 = vmatprep.subr.bf16.mxu1 %v600_v0  ;;  %v53_v1 = vld [vmem:[%s771_s4] sm:$0x3]  ;;  %v589_v8 = vld [vmem:[%s775_s6 + $0x8] sm:$0xff]   ;;  %v590_v11 = vld [vmem:[%s775_s6 + $0x10] sm:$0xff]  }
   0x2   :  { %v52_v2 = vld [vmem:[%s772_s3] sm:$0x3]  ;;  %v87_v3 = vsel %vm85_vm0, %v53_v1, 0  ;;  %536 = vmatprep.mubr.msk.bf16.mxu0 %vm601_vm2, %v600_v0  ;;  %542 = vmatprep.mubr.msk.bf16.mxu1 %vm601_vm2, %v600_v0  ;;  %v591_v12 = vld [vmem:[%s775_s6 + $0x18] sm:$0xff]   ;;  %v593_v14 = vld [vmem:[%s775_s6 + $0x28] sm:$0xff]  }
   0x3   :  { %v139_v4 = vsel %vm85_vm0, %v52_v2, 0  ;;  %v586_v5 = vld [vmem:[%s773_s1] sm:$0xff]   ;;  %535 = vmatpush3.bf16.msra.mxu0 %v87_v3  ;;  %v594_v15 = vld [vmem:[%s775_s6 + $0x30] sm:$0xff]   ;;  %v595_v18 = vld [vmem:[%s775_s6 + $0x38] sm:$0xff]  }
   0x4   :  { %v587_v6 = vld [vmem:[%s774_s0] sm:$0xff]   ;;  %541 = vmatpush3.bf16.msra.mxu1 %v139_v4  ;;  %546 = vmatprep.subr.bf16.mxu0 %v600_v0  ;;  %v430_v21 = vld [vmem:[%s779_s2 + $0x8] sm:$0xff] }
   0x5   :  { %552 = vmatprep.subr.bf16.mxu1 %v600_v0  ;;  %v588_v7 = vld [vmem:[%s775_s6] sm:$0xff]  }
   0x6   :  { %537 = vmatmul.mubr.msk.bf16.vlgmr.msra.gmra.mrb[0].mxu0 %vm81_vm1, %v586_v5  ;;  %v71_v9 = vld [vmem:[%s776_s7] sm:$0x3] }
   0x7   :  { %543 = vmatmul.mubr.msk.bf16.vlgmr.msra.gmra.mrb[0].mxu1 %vm81_vm1, %v587_v6  ;;  %548 = vmatprep.mubr.msk.bf16.mxu0 %vm601_vm2, %v600_v0  ;;  %v194_v10 = vsel %vm85_vm0, %v71_v9, 0  ;;  %v592_v13 = vld [vmem:[%s775_s6 + $0x20] sm:$0xff]  }
   0x8   :  { %553 = vmatpush3.bf16.msra.mxu1 %v588_v7  ;;  %568 = vmatprep.mubr.msk.bf16.mxu1 %vm601_vm2, %v600_v0  ;;  %v72_v16 = vld [vmem:[%s777_s8] sm:$0x3] }
   0x9   :  { %554 = vmatprep.subr.bf16.mxu1 %v600_v0  ;;  %547 = vmatpush3.bf16.msra.mxu0 %v194_v10  ;;  %v327_v17 = vsel %vm85_vm0, %v72_v16, 0  ;;  %v431_v19 = vld [vmem:[%s778_s12] sm:$0x3] }
   0xa   :  { %572 = vmatprep.subr.bf16.mxu0 %v600_v0  ;;  %v429_v20 = vld [vmem:[%s779_s2] sm:$0xff]  ;;  %v444_v22 = vsel %vm85_vm0, %v431_v19, 0 }
   0xb   :  { %v432_v23 = vpack.c.bf16 %v430_v21, %v429_v20  ;;  %v499_v25 = vld [vmem:[%s780_s5] ss:$0 sm:$0xff] }
   0xc   :  { %555 = vmatpush3.bf16.msra.mxu1 %v589_v8  ;;  %v510_v51 = vld [vmem:[%s781_s9] ss:$0 sm:$0xff] }
   0xd   :  { %556 = vmatprep.subr.bf16.mxu1 %v600_v0 }
   0xe   :  { %549 = vmatmul.mubr.msk.bf16.vlgmr.msra.gmra.mrb[4].mxu0 %vm81_vm1, %v587_v6 }
   0xf   :  { %574 = vmatprep.mubr.msk.bf16.mxu0 %vm601_vm2, %v600_v0  ;;  %573 = vmatpush3.bf16.msra.mxu0 %v327_v17 }
  0x10   :  { %557 = vmatpush3.bf16.msra.mxu1 %v590_v11  ;;  %578 = vmatprep.subr.bf16.mxu0 %v600_v0 }
  0x11   :  { %558 = vmatprep.subr.bf16.mxu1 %v600_v0 }
  0x14   :  { %559 = vmatpush3.bf16.msra.mxu1 %v591_v12 }
  0x15   :  { %560 = vmatprep.subr.bf16.mxu1 %v600_v0 }
  0x16   :  { %575 = vmatmul.mubr.msk.bf16.vlgmr.msra.gmra.mrb[8].mxu0 %vm81_vm1, %v586_v5 }
  0x17   :  { %580 = vmatprep.mubr.msk.bf16.mxu0 %vm601_vm2, %v600_v0  ;;  %579 = vmatpush3.bf16.msra.mxu0 %v444_v22 }
  0x18   :  { %561 = vmatpush3.bf16.msra.mxu1 %v592_v13 }
  0x19   :  { %562 = vmatprep.subr.bf16.mxu1 %v600_v0 }
  0x1c   :  { %563 = vmatpush3.bf16.msra.mxu1 %v593_v14 }
  0x1d   :  { %564 = vmatprep.subr.bf16.mxu1 %v600_v0 }
  0x1e   :  { %581 = vmatmul.mubr.msk.bf16.vlgmr.msra.gmra.mrb[12].mxu0 %vm81_vm1, %v432_v23  ;;  %v511_v23 = vld [vmem:[%s782_s10] ss:$0 sm:$0xff] }
  0x20   :  { %565 = vmatpush3.bf16.msra.mxu1 %v594_v15 }
  0x21   :  { %566 = vmatprep.subr.bf16.mxu1 %v600_v0 }
  0x24   :  { %567 = vmatpush3.bf16.msra.mxu1 %v595_v18 }
  0xd9   :  { %v123_v24 = vpop.f32.mrb[0].mxu0 }
  0xda   :  { %v175_v26 = vpop.f32.mrb[0].mxu1  ;;  %v538_v28 = vpop.f32.mrb[1].mxu0 }
  0xdb   :  { %v176_v27 = vadd.f32 %v175_v26, %v123_v24  ;;  %v544_v29 = vpop.f32.mrb[1].mxu1  ;;  %v126_v30 = vpop.f32.mrb[2].mxu0  ;;  %v513_v24 = vld [vmem:[%s783_s13] ss:$0 sm:$0xff] }
  0xdc   :  { %v178_v31 = vpop.f32.mrb[2].mxu1  ;;  %v539_v34 = vpop.f32.mrb[3].mxu0  ;;  %v512_v26 = vld [vmem:[%s784_s11] ss:$0 sm:$0xff] }
  0xdd   :  { %v188_v32 = vadd.f32 %v499_v25, %v176_v27  ;;  %v179_v33 = vadd.f32 %v178_v31, %v126_v30  ;;  %v545_v35 = vpop.f32.mrb[3].mxu1 }
  0xdf   :  { %v189_v36 = vadd.f32 %v499_v25, %v179_v33  ;;  %v190_v37 = vmax.f32 %v188_v32, 0.0 }
  0xe1   :  { %v191_v38 = vmax.f32 %v189_v36, 0.0  ;;  %v230_v39 = vpop.f32.mrb[4].mxu0 }
  0xe2   :  { %v550_v41 = vpop.f32.mrb[5].mxu0 }
  0xe3   :  { %v192_v40 = vpack.c.bf16 %v191_v38, %v190_v37  ;;  %v233_v42 = vpop.f32.mrb[6].mxu0 }
  0xe4   :  { %v551_v43 = vpop.f32.mrb[7].mxu0 }
  0xe5   :  { %569 = vmatmul.mubr.bf16.vlgmr.msra.gmra.mrb[4].mxu1 %v192_v40 }
  0xe9   :  { %v363_v44 = vpop.f32.mrb[8].mxu0 }
  0xea   :  { %v576_v45 = vpop.f32.mrb[9].mxu0 }
  0xeb   :  { %v366_v46 = vpop.f32.mrb[10].mxu0 }
  0xec   :  { %v577_v47 = vpop.f32.mrb[11].mxu0 }
  0xf1   :  { %v480_v1 = vpop.f32.mrb[12].mxu0 }
  0xf2   :  { %v582_v2 = vpop.f32.mrb[13].mxu0  ;;  %v481_v29 = vadd.f32 %v513_v24, %v480_v1 }
  0xf3   :  { %v483_v3 = vpop.f32.mrb[14].mxu0 }
  0xf4   :  { %v583_v4 = vpop.f32.mrb[15].mxu0  ;;  %v484_v36 = vadd.f32 %v513_v24, %v483_v3 }
 0x1b8   :  { %v319_v48 = vpop.f32.mrb[4].mxu1 }
 0x1b9   :  { %v320_v49 = vadd.f32 %v319_v48, %v230_v39  ;;  %v570_v50 = vpop.f32.mrb[5].mxu1 }
 0x1ba   :  { %v322_v52 = vpop.f32.mrb[6].mxu1 }
 0x1bb   :  { %v370_v53 = vadd.f32 %v363_v44, %v320_v49  ;;  %v323_v54 = vadd.f32 %v322_v52, %v233_v42  ;;  %v571_v55 = vpop.f32.mrb[7].mxu1 }
 0x1bd   :  { %v371_v56 = vadd.f32 %v366_v46, %v323_v54  ;;  %v378_v57 = vadd.f32 %v510_v51, %v370_v53 }
 0x1bf   :  { %v379_v58 = vadd.f32 %v510_v51, %v371_v56  ;;  %v380_v59 = vsel %vm81_vm1, %v378_v57, 0.0  ;;  %v389_v60 = vmul.f32 %v378_v57, %v378_v57 }
 0x1c0   :  { %381 = vadd.xlane.f32.xlu0 %v380_v59 }
 0x1c1   :  { %v391_v61 = vsel %vm81_vm1, %v389_v60, 0.0  ;;  %v390_v62 = vmul.f32 %v379_v58, %v379_v58  ;;  %v383_v63 = vsel %vm81_vm1, %v379_v58, 0.0 }
 0x1c2   :  { %392 = vadd.xlane.f32.xlu1 %v391_v61 }
 0x1c3   :  { %v394_v0 = vsel %vm81_vm1, %v390_v62, 0.0 }
 0x1c4   :  { %384 = vadd.xlane.f32.xlu0 %v383_v63 }
 0x1c6   :  { %395 = vadd.xlane.f32.xlu1 %v394_v0 }
 0x24d   :  { %v382_v5 = vpop.xlane.xlu0 %381 }
 0x24e   :  { %v387_v6 = vmul.f32 0.25, %v382_v5 }
 0x24f   :  { %v393_v7 = vpop.xlane.xlu1 %392 }
 0x250   :  { %v399_v8 = vmul.f32 %v387_v6, %v387_v6  ;;  %v397_v9 = vmul.f32 0.25, %v393_v7  ;;  %v405_v21 = vsub.f32 %v378_v57, %v387_v6 }
 0x251   :  { %v385_v10 = vpop.xlane.xlu0 %384 }
 0x252   :  { %v401_v11 = vsub.f32 %v397_v9, %v399_v8  ;;  %v388_v12 = vmul.f32 0.25, %v385_v10 }
 0x253   :  { %v396_v13 = vpop.xlane.xlu1 %395 }
 0x254   :  { %v403_v14 = vmax.f32 %v401_v11, 0.0  ;;  %v400_v15 = vmul.f32 %v388_v12, %v388_v12  ;;  %v398_v16 = vmul.f32 0.25, %v396_v13  ;;  %v406_v27 = vsub.f32 %v379_v58, %v388_v12 }
 0x256   :  { %v407_v17 = vadd.f32 1e-05, %v403_v14  ;;  %v402_v18 = vsub.f32 %v398_v16, %v400_v15 }
 0x258   :  { %596 = vrsqrt.f32 %v407_v17  ;;  %v404_v19 = vmax.f32 %v402_v18, 0.0 }
 0x25a   :  { %v408_v20 = vadd.f32 1e-05, %v404_v19 }
 0x25c   :  { %598 = vrsqrt.f32 %v408_v20 }
 0x262   :  { %v597_v22 = vpop.eup %596 }
 0x263   :  { %v411_v25 = vmul.f32 %v597_v22, %v405_v21 }
 0x265   :  { %v419_v28 = vmul.f32 %v511_v23, %v411_v25 }
 0x266   :  { %v599_v30 = vpop.eup %598 }
 0x267   :  { %v427_v31 = vadd.f32 %v512_v26, %v419_v28  ;;  %v412_v32 = vmul.f32 %v599_v30, %v406_v27 }
 0x269   :  { %v487_v33 = vadd.f32 %v481_v29, %v427_v31  ;;  %v420_v34 = vmul.f32 %v511_v23, %v412_v32 }
 0x26b   :  { %489 = vst.msk [vmem:[%s785_s14] sm:$0xff] %vm81_vm1, %v487_v33  ;;  %v428_v35 = vadd.f32 %v512_v26, %v420_v34 }
 0x26d   :  { %v488_v37 = vadd.f32 %v484_v36, %v428_v35 }
 0x26f   :  { %490 = vst.msk [vmem:[%s785_s14 + $0x8] sm:$0xff] %vm81_vm1, %v488_v37 }

// kernel: tide_forward.4
= control target key start
LH: loop header
LB: loop body
LE: loop exit
PB: predicated region body
PF: predicated region fallthrough
CT: control target
= control target key end

     0   :  { %v1770_v0 = vmov 0.0   ;;  %s1771_s3 = smov 3   ;;  %vm1772_vm0 = vmmov 0   ;;  %s1773_s7 = smov 2   ;;  %vm270_vm1 = vcmask 261120   ;;  %vm578_vm2 = vcmask 254976   ;;  %s2046_s0 = inlined_call_operand.smem [shape: u32[33], index: -1, kind: input, shape index: {}] }
   0x1   :  { %1516 = vmatprep.subr.bf16.mxu1 %v1770_v0  ;;  %s1342_s6 = sld [smem:[%s2046_s0 + %s1771_s3]]   ;;  %1520 = vmatprep.mubr.msk.bf16.mxu1 %vm1772_vm0, %v1770_v0  ;;  %s1774_s11 = smov 1   ;;  %vm1334_vm3 = vcmask 253952  }
   0x2   :  { %1560 = vmatprep.subr.bf16.mxu0 %v1770_v0  ;;  %1564 = vmatprep.mubr.msk.bf16.mxu0 %vm1772_vm0, %v1770_v0  ;;  %s1341_s10 = sld [smem:[%s2046_s0 + %s1773_s7]]   ;;  %s1775_s15 = smov 6  }
   0x3   :  { %s1340_s14 = sld [smem:[%s2046_s0 + %s1774_s11]]   ;;  %s1776_s19 = smov 5  }
   0x4   :  { %s1345_s18 = sld [smem:[%s2046_s0 + %s1775_s15]]   ;;  %s1777_s26 = smov 7  }
   0x5   :  { %s1830_s22 = sld [smem:[%s2046_s0 + %s1776_s19]]   ;;  %s1778_s30 = smov 4  }
   0x6   :  { %s1_s25 = sld [smem:[%s2046_s0]]   ;;  %s1779_s4 = smov 8  }
   0x7   :  { %v1710_v1 = vld [vmem:[%s1342_s6] sm:$0xff]   ;;  %v1711_v2 = vld [vmem:[%s1342_s6 + $0x8] sm:$0xff]   ;;  %s1346_s29 = sld [smem:[%s2046_s0 + %s1777_s26]]   ;;  %s1780_s8 = smov 11  }
   0x8   :  { %1517 = vmatpush3.bf16.msra.mxu1 %v1710_v1  ;;  %v1712_v4 = vld [vmem:[%s1341_s10] sm:$0xff]   ;;  %v1713_v5 = vld [vmem:[%s1341_s10 + $0x8] sm:$0xff]   ;;  %s1343_s3 = sld [smem:[%s2046_s0 + %s1778_s30]]   ;;  %s1781_s12 = smov 14  }
   0x9   :  { %1518 = vmatprep.subr.bf16.mxu1 %v1770_v0  ;;  %v256_v3 = vld [vmem:[%s1340_s14] sm:$0x1]  ;;  %s1347_s7 = sld [smem:[%s2046_s0 + %s1779_s4]]   ;;  %s1782_s16 = smov 13  }
   0xa   :  { %v1714_v8 = vld [vmem:[%s1345_s18] sm:$0xff]   ;;  %v1715_v9 = vld [vmem:[%s1345_s18 + $0x8] sm:$0xff]   ;;  %s1350_s11 = sld [smem:[%s2046_s0 + %s1780_s8]]   ;;  %s1783_s20 = smov 9  }
   0xb   :  { %v1716_v10 = vld [vmem:[%s1830_s22] sm:$0xff]   ;;  %v1717_v11 = vld [vmem:[%s1830_s22 + $0x8] sm:$0xff]   ;;  %v1718_v12 = vld [vmem:[%s1830_s22 + $0x10] sm:$0xff]   ;;  %s1353_s15 = sld [smem:[%s2046_s0 + %s1781_s12]]   ;;  %s1784_s24 = smov 10  }
   0xc   :  { %1519 = vmatpush3.bf16.msra.mxu1 %v1711_v2  ;;  %v255_v6 = vld [vmem:[%s1_s25] sm:$0x3]  ;;  %v1719_v13 = vld [vmem:[%s1830_s22 + $0x18] sm:$0xff]   ;;  %v1721_v15 = vld [vmem:[%s1830_s22 + $0x28] sm:$0xff]   ;;  %s1895_s19 = sld [smem:[%s2046_s0 + %s1782_s16]]   ;;  %s1785_s28 = smov 12  }
   0xd   :  { %1524 = vmatprep.subr.bf16.mxu1 %v1770_v0  ;;  %v257_v7 = vpack.c.bf16 %v255_v6, %v255_v6  ;;  %v1720_v14 = vld [vmem:[%s1830_s22 + $0x20] sm:$0xff]   ;;  %v1722_v17 = vld [vmem:[%s1830_s22 + $0x30] sm:$0xff]   ;;  %v1725_v18 = vld [vmem:[%s1346_s29 + $0x8] sm:$0xff]   ;;  %s1348_s23 = sld [smem:[%s2046_s0 + %s1783_s20]]   ;;  %s1786_s2 = smov 15  }
   0xe   :  { %v1723_v16 = vld [vmem:[%s1346_s29] sm:$0xff]   ;;  %v1724_v19 = vld [vmem:[%s1830_s22 + $0x38] sm:$0xff]   ;;  %s1349_s27 = sld [smem:[%s2046_s0 + %s1784_s24]]   ;;  %s1787_s6 = smov 18  }
   0xf   :  { %1521 = vmatmul.mubr.msk.bf16.vlgmr.msra.gmra.mrb[0].mxu1 %vm270_vm1, %v256_v3  ;;  %1561 = vmatpush3.bf16.msra.mxu0 %v1723_v16  ;;  %v1378_v24 = vld [vmem:[%s1343_s3] ss:$0 sm:$0xff]  ;;  %s1351_s1 = sld [smem:[%s2046_s0 + %s1785_s28]]   ;;  %s1788_s10 = smov 21  }
  0x10   :  { %1525 = vmatpush3.bf16.msra.mxu1 %v1712_v4  ;;  %1528 = vmatprep.mubr.msk.bf16.mxu1 %vm1772_vm0, %v1770_v0  ;;  %v1393_v44 = vld [vmem:[%s1347_s7] ss:$0 sm:$0xff]  ;;  %v1727_v53 = vld [vmem:[%s1350_s11 + $0x8] sm:$0xff]   ;;  %s1354_s5 = sld [smem:[%s2046_s0 + %s1786_s2]]   ;;  %s1789_s14 = smov 20  }
  0x11   :  { %1526 = vmatprep.subr.bf16.mxu1 %v1770_v0  ;;  %1562 = vmatprep.subr.bf16.mxu0 %v1770_v0  ;;  %v1726_v52 = vld [vmem:[%s1350_s11] sm:$0xff]   ;;  %s1357_s9 = sld [smem:[%s2046_s0 + %s1787_s6]]   ;;  %s1790_s18 = smov 16  }
  0x12   :  { %v1728_v6 = vld [vmem:[%s1353_s15] sm:$0xff]   ;;  %v1737_v16 = vld [vmem:[%s1895_s19 + $0x38] sm:$0xff]   ;;  %s1360_s13 = sld [smem:[%s2046_s0 + %s1788_s10]]   ;;  %s1791_s22 = smov 17  }
  0x13   :  { %1563 = vmatpush3.bf16.msra.mxu0 %v1725_v18  ;;  %v1394_v1 = vld [vmem:[%s1348_s23] ss:$0 sm:$0xff]  ;;  %s1948_s17 = sld [smem:[%s2046_s0 + %s1789_s14]]   ;;  %s1792_s26 = smov 19  }
  0x14   :  { %1527 = vmatpush3.bf16.msra.mxu1 %v1713_v5  ;;  %1568 = vmatprep.subr.bf16.mxu0 %v1770_v0  ;;  %s1355_s21 = sld [smem:[%s2046_s0 + %s1790_s18]]   ;;  %s1793_s30 = smov 22  }
  0x15   :  { %1532 = vmatprep.subr.bf16.mxu1 %v1770_v0  ;;  %s1356_s25 = sld [smem:[%s2046_s0 + %s1791_s22]]   ;;  %s1794_s4 = smov 25  }
  0x16   :  { %1565 = vmatmul.mubr.msk.bf16.vlgmr.msra.gmra.mrb[0].mxu0 %vm270_vm1, %v256_v3  ;;  %v1395_v3 = vld [vmem:[%s1349_s27] ss:$0 sm:$0xff]  ;;  %s1358_s29 = sld [smem:[%s2046_s0 + %s1792_s26]]   ;;  %s1795_s8 = smov 28  }
  0x17   :  { %1529 = vmatmul.mubr.msk.bf16.vlgmr.msra.gmra.mrb[4].mxu1 %vm270_vm1, %v257_v7  ;;  %1572 = vmatprep.mubr.msk.bf16.mxu0 %vm1772_vm0, %v1770_v0  ;;  %s1361_s3 = sld [smem:[%s2046_s0 + %s1793_s30]]   ;;  %s1796_s12 = smov 27  }
  0x18   :  { %1533 = vmatpush3.bf16.msra.mxu1 %v1714_v8  ;;  %1536 = vmatprep.mubr.msk.bf16.mxu1 %vm1772_vm0, %v1770_v0  ;;  %v1729_v8 = vld [vmem:[%s1353_s15 + $0x8] sm:$0xff]   ;;  %s1364_s7 = sld [smem:[%s2046_s0 + %s1794_s4]]   ;;  %s1797_s16 = smov 23  }
  0x19   :  { %1534 = vmatprep.subr.bf16.mxu1 %v1770_v0  ;;  %1569 = vmatpush3.bf16.msra.mxu0 %v1726_v52  ;;  %s1367_s11 = sld [smem:[%s2046_s0 + %s1795_s8]]   ;;  %s1798_s20 = smov 24  }
  0x1a   :  { %1570 = vmatprep.subr.bf16.mxu0 %v1770_v0  ;;  %s1998_s15 = sld [smem:[%s2046_s0 + %s1796_s12]]   ;;  %s1799_s24 = smov 26  }
  0x1b   :  { %s1363_s23 = sld [smem:[%s2046_s0 + %s1798_s20]]   ;;  %s1800_s28 = smov 29  }
  0x1c   :  { %1535 = vmatpush3.bf16.msra.mxu1 %v1715_v9  ;;  %v1730_v9 = vld [vmem:[%s1895_s19] sm:$0xff]   ;;  %s1365_s27 = sld [smem:[%s2046_s0 + %s1799_s24]]   ;;  %s1801_s2 = smov 30  }
  0x1d   :  { %1540 = vmatprep.subr.bf16.mxu1 %v1770_v0  ;;  %1571 = vmatpush3.bf16.msra.mxu0 %v1727_v53  ;;  %v1399_v53 = vld [vmem:[%s1356_s25] ss:$0 sm:$0xff]  ;;  %s1802_s6 = smov 31   ;;  %s1803_s10 = smov 32  }
  0x1e   :  { %1576 = vmatprep.subr.bf16.mxu0 %v1770_v0 }
  0x1f   :  { %1537 = vmatmul.mubr.msk.bf16.vlgmr.msra.gmra.mrb[8].mxu1 %vm270_vm1, %v257_v7 }
  0x20   :  { %1541 = vmatpush3.bf16.msra.mxu1 %v1716_v10  ;;  %1556 = vmatprep.mubr.msk.bf16.mxu1 %vm1772_vm0, %v1770_v0  ;;  %v1731_v10 = vld [vmem:[%s1895_s19 + $0x8] sm:$0xff]  }
  0x21   :  { %1542 = vmatprep.subr.bf16.mxu1 %v1770_v0 }
  0x24   :  { %1543 = vmatpush3.bf16.msra.mxu1 %v1717_v11  ;;  %v1732_v11 = vld [vmem:[%s1895_s19 + $0x10] sm:$0xff]  }
  0x25   :  { %1544 = vmatprep.subr.bf16.mxu1 %v1770_v0 }
  0x28   :  { %1545 = vmatpush3.bf16.msra.mxu1 %v1718_v12  ;;  %v1733_v12 = vld [vmem:[%s1895_s19 + $0x18] sm:$0xff]  }
  0x29   :  { %1546 = vmatprep.subr.bf16.mxu1 %v1770_v0 }
  0x2c   :  { %1547 = vmatpush3.bf16.msra.mxu1 %v1719_v13  ;;  %v1734_v13 = vld [vmem:[%s1895_s19 + $0x20] sm:$0xff]  }
  0x2d   :  { %1548 = vmatprep.subr.bf16.mxu1 %v1770_v0 }
  0x30   :  { %1549 = vmatpush3.bf16.msra.mxu1 %v1720_v14  ;;  %v1735_v14 = vld [vmem:[%s1895_s19 + $0x28] sm:$0xff]  }
  0x31   :  { %1550 = vmatprep.subr.bf16.mxu1 %v1770_v0 }
  0x34   :  { %1551 = vmatpush3.bf16.msra.mxu1 %v1721_v15  ;;  %v1736_v15 = vld [vmem:[%s1895_s19 + $0x30] sm:$0xff]   ;;  %s1362_s19 = sld [smem:[%s2046_s0 + %s1797_s16]]  }
  0x35   :  { %1552 = vmatprep.subr.bf16.mxu1 %v1770_v0 }
  0x38   :  { %1553 = vmatpush3.bf16.msra.mxu1 %v1722_v17  ;;  %v1396_v17 = vld [vmem:[%s1351_s1] ss:$0 sm:$0xff]  ;;  %s1368_s1 = sld [smem:[%s2046_s0 + %s1800_s28]]  }
  0x39   :  { %1554 = vmatprep.subr.bf16.mxu1 %v1770_v0 }
  0x3c   :  { %1555 = vmatpush3.bf16.msra.mxu1 %v1724_v19 }
  0x3d   :  { %1604 = vmatprep.subr.bf16.mxu1 %v1770_v0 }
  0xe2   :  { %v308_v20 = vpop.f32.mrb[0].mxu1 }
  0xe3   :  { %v1522_v21 = vpop.f32.mrb[1].mxu1 }
  0xe4   :  { %v311_v22 = vpop.f32.mrb[2].mxu1 }
  0xe5   :  { %v1523_v23 = vpop.f32.mrb[3].mxu1 }
  0xe9   :  { %v564_v37 = vpop.f32.mrb[0].mxu0 }
  0xea   :  { %v363_v25 = vpop.f32.mrb[4].mxu1  ;;  %v1566_v38 = vpop.f32.mrb[1].mxu0 }
  0xeb   :  { %v364_v26 = vadd.f32 %v363_v25, %v308_v20  ;;  %v1530_v27 = vpop.f32.mrb[5].mxu1  ;;  %v567_v39 = vpop.f32.mrb[2].mxu0 }
  0xec   :  { %v366_v28 = vpop.f32.mrb[6].mxu1  ;;  %v1567_v40 = vpop.f32.mrb[3].mxu0  ;;  %v1738_v39 = vld [vmem:[%s1357_s9] sm:$0xff]  }
  0xed   :  { %v375_v29 = vadd.f32 %v1378_v24, %v364_v26  ;;  %v1531_v30 = vpop.f32.mrb[7].mxu1  ;;  %v1739_v40 = vld [vmem:[%s1357_s9 + $0x8] sm:$0xff]   ;;  %s1370_s9 = sld [smem:[%s2046_s0 + %s1802_s6]]  }
  0xef   :  { %v376_v31 = vmax.f32 %v375_v29, 0.0  ;;  %v1397_v29 = vld [vmem:[%s1354_s5] ss:$0 sm:$0xff]  ;;  %s1369_s5 = sld [smem:[%s2046_s0 + %s1801_s2]]  }
  0xf1   :  { %v377_v32 = vpack.c.bf16 %v376_v31, %v376_v31 }
  0xf2   :  { %v424_v33 = vpop.f32.mrb[8].mxu1 }
  0xf3   :  { %1557 = vmatmul.mubr.bf16.vlgmr.msra.gmra.mrb[12].mxu1 %v377_v32  ;;  %v1538_v34 = vpop.f32.mrb[9].mxu1 }
  0xf4   :  { %v427_v35 = vpop.f32.mrb[10].mxu1  ;;  %1608 = vmatprep.mubr.msk.bf16.mxu1 %vm1772_vm0, %v1770_v0  ;;  %1605 = vmatpush3.bf16.msra.mxu1 %v1738_v39 }
  0xf5   :  { %v1539_v36 = vpop.f32.mrb[11].mxu1  ;;  %1606 = vmatprep.subr.bf16.mxu1 %v1770_v0 }
  0xf8   :  { %1607 = vmatpush3.bf16.msra.mxu1 %v1739_v40  ;;  %v1403_v40 = vld [vmem:[%s1363_s23] ss:$0 sm:$0xff] }
  0xf9   :  { %1612 = vmatprep.subr.bf16.mxu1 %v1770_v0 }
 0x1c6   :  { %v512_v41 = vpop.f32.mrb[12].mxu1 }
 0x1c7   :  { %v513_v42 = vadd.f32 %v512_v41, %v424_v33  ;;  %v1558_v43 = vpop.f32.mrb[13].mxu1 }
 0x1c8   :  { %v515_v45 = vpop.f32.mrb[14].mxu1 }
 0x1c9   :  { %v570_v46 = vadd.f32 %v564_v37, %v513_v42  ;;  %v1559_v47 = vpop.f32.mrb[15].mxu1 }
 0x1cb   :  { %v577_v48 = vadd.f32 %v1393_v44, %v570_v46 }
 0x1cd   :  { %v579_v49 = vsel %vm578_vm2, %v577_v48, 0.0  ;;  %v584_v50 = vmul.f32 %v577_v48, %v577_v48 }
 0x1ce   :  { %580 = vadd.xlane.f32.xlu0 %v579_v49 }
 0x1cf   :  { %v585_v51 = vsel %vm578_vm2, %v584_v50, 0.0 }
 0x1d2   :  { %586 = vadd.xlane.f32.xlu0 %v585_v51  ;;  %v1398_v51 = vld [vmem:[%s1355_s21] ss:$0 sm:$0xff] }
 0x25b   :  { %v581_v54 = vpop.xlane.xlu0 %580 }
 0x25c   :  { %v583_v55 = vmul.f32 0.03125, %v581_v54 }
 0x25e   :  { %v589_v57 = vmul.f32 %v583_v55, %v583_v55  ;;  %v592_v62 = vsub.f32 %v577_v48, %v583_v55 }
 0x25f   :  { %v587_v56 = vpop.xlane.xlu0 %586 }
 0x260   :  { %v588_v58 = vmul.f32 0.03125, %v587_v56  ;;  %v1740_v56 = vld [vmem:[%s1360_s13] sm:$0xff]  }
 0x262   :  { %v590_v59 = vsub.f32 %v588_v58, %v589_v57  ;;  %v1741_v58 = vld [vmem:[%s1360_s13 + $0x8] sm:$0xff]   ;;  %s1371_s13 = sld [smem:[%s2046_s0 + %s1803_s10]]  }
 0x264   :  { %v591_v60 = vmax.f32 %v590_v59, 0.0  ;;  %v1742_v59 = vld [vmem:[%s1948_s17] sm:$0xff]  }
 0x266   :  { %v593_v61 = vadd.f32 1e-05, %v591_v60  ;;  %v1743_v60 = vld [vmem:[%s1948_s17 + $0x8] sm:$0xff]  }
 0x268   :  { %1762 = vrsqrt.f32 %v593_v61  ;;  %v1744_v61 = vld [vmem:[%s1948_s17 + $0x10] sm:$0xff]  }
 0x272   :  { %v1763_v63 = vpop.eup %1762 }
 0x273   :  { %v595_v2 = vmul.f32 %v1763_v63, %v592_v62  ;;  %v1745_v62 = vld [vmem:[%s1948_s17 + $0x18] sm:$0xff]   ;;  %v1746_v63 = vld [vmem:[%s1948_s17 + $0x20] sm:$0xff]  }
 0x275   :  { %v602_v4 = vmul.f32 %v1394_v1, %v595_v2  ;;  %v1747_v1 = vld [vmem:[%s1948_s17 + $0x28] sm:$0xff]   ;;  %v1748_v2 = vld [vmem:[%s1948_s17 + $0x30] sm:$0xff]  }
 0x277   :  { %v609_v5 = vadd.f32 %v1395_v3, %v602_v4  ;;  %v1749_v3 = vld [vmem:[%s1948_s17 + $0x38] sm:$0xff]   ;;  %v1400_v4 = vld [vmem:[%s1358_s29] ss:$0 sm:$0xff] }
 0x279   :  { %v658_v7 = vpack.c.bf16 %v609_v5, %v609_v5 }
 0x27b   :  { %1573 = vmatmul.mubr.msk.bf16.vlgmr.msra.gmra.mrb[4].mxu0 %vm270_vm1, %v658_v7 }
 0x27c   :  { %1577 = vmatpush3.bf16.msra.mxu0 %v1728_v6  ;;  %1580 = vmatprep.mubr.msk.bf16.mxu0 %vm1772_vm0, %v1770_v0 }
 0x27d   :  { %1578 = vmatprep.subr.bf16.mxu0 %v1770_v0 }
 0x280   :  { %1579 = vmatpush3.bf16.msra.mxu0 %v1729_v8 }
 0x281   :  { %1584 = vmatprep.subr.bf16.mxu0 %v1770_v0 }
 0x283   :  { %1581 = vmatmul.mubr.msk.bf16.vlgmr.msra.gmra.mrb[8].mxu0 %vm270_vm1, %v658_v7 }
 0x284   :  { %1585 = vmatpush3.bf16.msra.mxu0 %v1730_v9  ;;  %1600 = vmatprep.mubr.msk.bf16.mxu0 %vm1772_vm0, %v1770_v0 }
 0x285   :  { %1586 = vmatprep.subr.bf16.mxu0 %v1770_v0 }
 0x288   :  { %1587 = vmatpush3.bf16.msra.mxu0 %v1731_v10 }
 0x289   :  { %1588 = vmatprep.subr.bf16.mxu0 %v1770_v0 }
 0x28c   :  { %1589 = vmatpush3.bf16.msra.mxu0 %v1732_v11 }
 0x28d   :  { %1590 = vmatprep.subr.bf16.mxu0 %v1770_v0 }
 0x290   :  { %1591 = vmatpush3.bf16.msra.mxu0 %v1733_v12 }
 0x291   :  { %1592 = vmatprep.subr.bf16.mxu0 %v1770_v0 }
 0x294   :  { %1593 = vmatpush3.bf16.msra.mxu0 %v1734_v13 }
 0x295   :  { %1594 = vmatprep.subr.bf16.mxu0 %v1770_v0 }
 0x298   :  { %1595 = vmatpush3.bf16.msra.mxu0 %v1735_v14 }
 0x299   :  { %1596 = vmatprep.subr.bf16.mxu0 %v1770_v0 }
 0x29c   :  { %1597 = vmatpush3.bf16.msra.mxu0 %v1736_v15 }
 0x29d   :  { %1598 = vmatprep.subr.bf16.mxu0 %v1770_v0 }
 0x2a0   :  { %1599 = vmatpush3.bf16.msra.mxu0 %v1737_v16  ;;  %v1401_v16 = vld [vmem:[%s1361_s3] ss:$0 sm:$0xff] }
 0x2a1   :  { %1640 = vmatprep.subr.bf16.mxu0 %v1770_v0 }
 0x34e   :  { %v708_v18 = vpop.f32.mrb[4].mxu0 }
 0x34f   :  { %v709_v19 = vadd.f32 %v1396_v17, %v708_v18  ;;  %v1574_v20 = vpop.f32.mrb[5].mxu0 }
 0x350   :  { %v711_v21 = vpop.f32.mrb[6].mxu0 }
 0x351   :  { %v714_v22 = vmax.f32 %v709_v19, 0.0  ;;  %v1575_v23 = vpop.f32.mrb[7].mxu0 }
 0x353   :  { %v715_v24 = vpack.c.bf16 %v714_v22, %v714_v22 }
 0x355   :  { %1601 = vmatmul.mubr.bf16.vlgmr.msra.gmra.mrb[12].mxu0 %v715_v24 }
 0x356   :  { %v762_v25 = vpop.f32.mrb[8].mxu0  ;;  %1644 = vmatprep.mubr.msk.bf16.mxu0 %vm1772_vm0, %v1770_v0 }
 0x357   :  { %v1582_v26 = vpop.f32.mrb[9].mxu0 }
 0x358   :  { %v765_v27 = vpop.f32.mrb[10].mxu0  ;;  %v1750_v26 = vld [vmem:[%s1364_s7] sm:$0xff]  }
 0x359   :  { %v1583_v28 = vpop.f32.mrb[11].mxu0  ;;  %1641 = vmatpush3.bf16.msra.mxu0 %v1750_v26  ;;  %v1751_v27 = vld [vmem:[%s1364_s7 + $0x8] sm:$0xff]  }
 0x35a   :  { %1642 = vmatprep.subr.bf16.mxu0 %v1770_v0 }
 0x35d   :  { %1643 = vmatpush3.bf16.msra.mxu0 %v1751_v27 }
 0x35e   :  { %1648 = vmatprep.subr.bf16.mxu0 %v1770_v0 }
 0x428   :  { %v850_v30 = vpop.f32.mrb[12].mxu0 }
 0x429   :  { %v851_v31 = vadd.f32 %v850_v30, %v762_v25  ;;  %v1602_v32 = vpop.f32.mrb[13].mxu0 }
 0x42a   :  { %v853_v33 = vpop.f32.mrb[14].mxu0 }
 0x42b   :  { %v856_v34 = vadd.f32 %v1397_v29, %v851_v31  ;;  %v1603_v35 = vpop.f32.mrb[15].mxu0 }
 0x42d   :  { %v857_v36 = vsel %vm578_vm2, %v856_v34, 0.0  ;;  %v861_v37 = vmul.f32 %v856_v34, %v856_v34 }
 0x42e   :  { %858 = vadd.xlane.f32.xlu1 %v857_v36 }
 0x42f   :  { %v862_v38 = vsel %vm578_vm2, %v861_v37, 0.0 }
 0x432   :  { %863 = vadd.xlane.f32.xlu1 %v862_v38  ;;  %v1402_v38 = vld [vmem:[%s1362_s19] ss:$0 sm:$0xff] }
 0x4bb   :  { %v859_v41 = vpop.xlane.xlu1 %858 }
 0x4bc   :  { %v860_v42 = vmul.f32 0.03125, %v859_v41 }
 0x4be   :  { %v866_v44 = vmul.f32 %v860_v42, %v860_v42  ;;  %v869_v49 = vsub.f32 %v856_v34, %v860_v42 }
 0x4bf   :  { %v864_v43 = vpop.xlane.xlu1 %863 }
 0x4c0   :  { %v865_v45 = vmul.f32 0.03125, %v864_v43  ;;  %v1752_v43 = vld [vmem:[%s1367_s11] sm:$0xff]  }
 0x4c2   :  { %v867_v46 = vsub.f32 %v865_v45, %v866_v44  ;;  %v1753_v45 = vld [vmem:[%s1367_s11 + $0x8] sm:$0xff]  }
 0x4c4   :  { %v868_v47 = vmax.f32 %v867_v46, 0.0  ;;  %v1754_v46 = vld [vmem:[%s1998_s15] sm:$0xff]  }
 0x4c6   :  { %v870_v48 = vadd.f32 1e-05, %v868_v47  ;;  %v1755_v47 = vld [vmem:[%s1998_s15 + $0x8] sm:$0xff]  }
 0x4c8   :  { %1764 = vrsqrt.f32 %v870_v48  ;;  %v1756_v48 = vld [vmem:[%s1998_s15 + $0x10] sm:$0xff]  }
 0x4d2   :  { %v1765_v50 = vpop.eup %1764 }
 0x4d3   :  { %v872_v52 = vmul.f32 %v1765_v50, %v869_v49  ;;  %v1757_v49 = vld [vmem:[%s1998_s15 + $0x18] sm:$0xff]   ;;  %v1758_v50 = vld [vmem:[%s1998_s15 + $0x20] sm:$0xff]  }
 0x4d5   :  { %v873_v54 = vmul.f32 %v1398_v51, %v872_v52  ;;  %v1759_v51 = vld [vmem:[%s1998_s15 + $0x28] sm:$0xff]   ;;  %v1760_v52 = vld [vmem:[%s1998_s15 + $0x30] sm:$0xff]  }
 0x4d7   :  { %v874_v55 = vadd.f32 %v1399_v53, %v873_v54  ;;  %v1761_v53 = vld [vmem:[%s1998_s15 + $0x38] sm:$0xff]   ;;  %v1432_v54 = vld [vmem:[%s1365_s27] ss:$0 sm:$0xff] }
 0x4d9   :  { %v875_v57 = vpack.c.bf16 %v874_v55, %v874_v55 }
 0x4db   :  { %1609 = vmatmul.mubr.msk.bf16.vlgmr.msra.gmra.mrb[16].mxu1 %vm270_vm1, %v875_v57 }
 0x4dc   :  { %1613 = vmatpush3.bf16.msra.mxu1 %v1740_v56  ;;  %1616 = vmatprep.mubr.msk.bf16.mxu1 %vm1772_vm0, %v1770_v0 }
 0x4dd   :  { %1614 = vmatprep.subr.bf16.mxu1 %v1770_v0 }
 0x4e0   :  { %1615 = vmatpush3.bf16.msra.mxu1 %v1741_v58 }
 0x4e1   :  { %1620 = vmatprep.subr.bf16.mxu1 %v1770_v0 }
 0x4e3   :  { %1617 = vmatmul.mubr.msk.bf16.vlgmr.msra.gmra.mrb[20].mxu1 %vm270_vm1, %v875_v57 }
 0x4e4   :  { %1621 = vmatpush3.bf16.msra.mxu1 %v1742_v59  ;;  %1636 = vmatprep.mubr.msk.bf16.mxu1 %vm1772_vm0, %v1770_v0 }
 0x4e5   :  { %1622 = vmatprep.subr.bf16.mxu1 %v1770_v0 }
 0x4e8   :  { %1623 = vmatpush3.bf16.msra.mxu1 %v1743_v60 }
 0x4e9   :  { %1624 = vmatprep.subr.bf16.mxu1 %v1770_v0 }
 0x4ec   :  { %1625 = vmatpush3.bf16.msra.mxu1 %v1744_v61 }
 0x4ed   :  { %1626 = vmatprep.subr.bf16.mxu1 %v1770_v0 }
 0x4f0   :  { %1627 = vmatpush3.bf16.msra.mxu1 %v1745_v62 }
 0x4f1   :  { %1628 = vmatprep.subr.bf16.mxu1 %v1770_v0 }
 0x4f4   :  { %1629 = vmatpush3.bf16.msra.mxu1 %v1746_v63 }
 0x4f5   :  { %1630 = vmatprep.subr.bf16.mxu1 %v1770_v0 }
 0x4f8   :  { %1631 = vmatpush3.bf16.msra.mxu1 %v1747_v1 }
 0x4f9   :  { %1632 = vmatprep.subr.bf16.mxu1 %v1770_v0 }
 0x4fc   :  { %1633 = vmatpush3.bf16.msra.mxu1 %v1748_v2  ;;  %v1447_v2 = vld [vmem:[%s1368_s1] ss:$0 sm:$0xff] }
 0x4fd   :  { %1634 = vmatprep.subr.bf16.mxu1 %v1770_v0 }
 0x500   :  { %1635 = vmatpush3.bf16.msra.mxu1 %v1749_v3 }
 0x5ae   :  { %v925_v5 = vpop.f32.mrb[16].mxu1 }
 0x5af   :  { %v926_v6 = vadd.f32 %v1400_v4, %v925_v5  ;;  %v1610_v7 = vpop.f32.mrb[17].mxu1 }
 0x5b0   :  { %v928_v8 = vpop.f32.mrb[18].mxu1 }
 0x5b1   :  { %v931_v9 = vmax.f32 %v926_v6, 0.0  ;;  %v1611_v10 = vpop.f32.mrb[19].mxu1 }
 0x5b3   :  { %v932_v11 = vpack.c.bf16 %v931_v9, %v931_v9 }
 0x5b5   :  { %1637 = vmatmul.mubr.bf16.vlgmr.msra.gmra.mrb[24].mxu1 %v932_v11 }
 0x5b6   :  { %v979_v12 = vpop.f32.mrb[20].mxu1 }
 0x5b7   :  { %v1618_v13 = vpop.f32.mrb[21].mxu1 }
 0x5b8   :  { %v982_v14 = vpop.f32.mrb[22].mxu1 }
 0x5b9   :  { %v1619_v15 = vpop.f32.mrb[23].mxu1 }
 0x688   :  { %v1067_v17 = vpop.f32.mrb[24].mxu1 }
 0x689   :  { %v1068_v18 = vadd.f32 %v1067_v17, %v979_v12  ;;  %v1638_v19 = vpop.f32.mrb[25].mxu1 }
 0x68a   :  { %v1070_v20 = vpop.f32.mrb[26].mxu1 }
 0x68b   :  { %v1073_v21 = vadd.f32 %v1401_v16, %v1068_v18  ;;  %v1639_v22 = vpop.f32.mrb[27].mxu1 }
 0x68c   :  { %v1448_v22 = vld [vmem:[%s1369_s5] ss:$0 sm:$0xff] }
 0x68d   :  { %v1074_v23 = vsel %vm578_vm2, %v1073_v21, 0.0  ;;  %v1078_v24 = vmul.f32 %v1073_v21, %v1073_v21 }
 0x68e   :  { %1075 = vadd.xlane.f32.xlu0 %v1074_v23 }
 0x68f   :  { %v1079_v25 = vsel %vm578_vm2, %v1078_v24, 0.0  ;;  %v1449_v24 = vld [vmem:[%s1370_s9] ss:$0 sm:$0xff] }
 0x690   :  { %1080 = vadd.xlane.f32.xlu1 %v1079_v25 }
 0x71b   :  { %v1076_v28 = vpop.xlane.xlu0 %1075 }
 0x71c   :  { %v1077_v29 = vmul.f32 0.03125, %v1076_v28 }
 0x71d   :  { %v1081_v30 = vpop.xlane.xlu1 %1080 }
 0x71e   :  { %v1083_v31 = vmul.f32 %v1077_v29, %v1077_v29  ;;  %v1082_v32 = vmul.f32 0.03125, %v1081_v30  ;;  %v1086_v36 = vsub.f32 %v1073_v21, %v1077_v29 }
 0x720   :  { %v1084_v33 = vsub.f32 %v1082_v32, %v1083_v31 }
 0x722   :  { %v1085_v34 = vmax.f32 %v1084_v33, 0.0 }
 0x724   :  { %v1087_v35 = vadd.f32 1e-05, %v1085_v34 }
 0x726   :  { %1766 = vrsqrt.f32 %v1087_v35 }
 0x730   :  { %v1767_v37 = vpop.eup %1766 }
 0x731   :  { %v1089_v39 = vmul.f32 %v1767_v37, %v1086_v36 }
 0x733   :  { %v1090_v41 = vmul.f32 %v1402_v38, %v1089_v39 }
 0x735   :  { %v1091_v42 = vadd.f32 %v1403_v40, %v1090_v41 }
 0x737   :  { %v1092_v44 = vpack.c.bf16 %v1091_v42, %v1091_v42 }
 0x739   :  { %1645 = vmatmul.mubr.msk.bf16.vlgmr.msra.gmra.mrb[16].mxu0 %vm270_vm1, %v1092_v44 }
 0x73a   :  { %1649 = vmatpush3.bf16.msra.mxu0 %v1752_v43  ;;  %1652 = vmatprep.mubr.msk.bf16.mxu0 %vm1772_vm0, %v1770_v0 }
 0x73b   :  { %1650 = vmatprep.subr.bf16.mxu0 %v1770_v0 }
 0x73e   :  { %1651 = vmatpush3.bf16.msra.mxu0 %v1753_v45 }
 0x73f   :  { %1656 = vmatprep.subr.bf16.mxu0 %v1770_v0 }
 0x741   :  { %1653 = vmatmul.mubr.msk.bf16.vlgmr.msra.gmra.mrb[20].mxu0 %vm270_vm1, %v1092_v44 }
 0x742   :  { %1657 = vmatpush3.bf16.msra.mxu0 %v1754_v46  ;;  %1672 = vmatprep.mubr.msk.bf16.mxu0 %vm1772_vm0, %v1770_v0 }
 0x743   :  { %1658 = vmatprep.subr.bf16.mxu0 %v1770_v0 }
 0x746   :  { %1659 = vmatpush3.bf16.msra.mxu0 %v1755_v47 }
 0x747   :  { %1660 = vmatprep.subr.bf16.mxu0 %v1770_v0 }
 0x74a   :  { %1661 = vmatpush3.bf16.msra.mxu0 %v1756_v48 }
 0x74b   :  { %1662 = vmatprep.subr.bf16.mxu0 %v1770_v0 }
 0x74e   :  { %1663 = vmatpush3.bf16.msra.mxu0 %v1757_v49 }
 0x74f   :  { %1664 = vmatprep.subr.bf16.mxu0 %v1770_v0 }
 0x752   :  { %1665 = vmatpush3.bf16.msra.mxu0 %v1758_v50 }
 0x753   :  { %1666 = vmatprep.subr.bf16.mxu0 %v1770_v0 }
 0x756   :  { %1667 = vmatpush3.bf16.msra.mxu0 %v1759_v51 }
 0x757   :  { %1668 = vmatprep.subr.bf16.mxu0 %v1770_v0 }
 0x75a   :  { %1669 = vmatpush3.bf16.msra.mxu0 %v1760_v52 }
 0x75b   :  { %1670 = vmatprep.subr.bf16.mxu0 %v1770_v0 }
 0x75e   :  { %1671 = vmatpush3.bf16.msra.mxu0 %v1761_v53 }
 0x80c   :  { %v1148_v55 = vpop.f32.mrb[16].mxu0 }
 0x80d   :  { %v1149_v56 = vadd.f32 %v1432_v54, %v1148_v55  ;;  %v1646_v57 = vpop.f32.mrb[17].mxu0 }
 0x80e   :  { %v1151_v58 = vpop.f32.mrb[18].mxu0 }
 0x80f   :  { %v1154_v59 = vmax.f32 %v1149_v56, 0.0  ;;  %v1647_v60 = vpop.f32.mrb[19].mxu0 }
 0x811   :  { %v1155_v61 = vpack.c.bf16 %v1154_v59, %v1154_v59 }
 0x813   :  { %1673 = vmatmul.mubr.bf16.vlgmr.msra.gmra.mrb[24].mxu0 %v1155_v61 }
 0x814   :  { %v1202_v62 = vpop.f32.mrb[20].mxu0 }
 0x815   :  { %v1654_v63 = vpop.f32.mrb[21].mxu0 }
 0x816   :  { %v1205_v1 = vpop.f32.mrb[22].mxu0 }
 0x817   :  { %v1655_v0 = vpop.f32.mrb[23].mxu0 }
 0x8e6   :  { %v1290_v3 = vpop.f32.mrb[24].mxu0 }
 0x8e7   :  { %v1291_v4 = vadd.f32 %v1290_v3, %v1202_v62  ;;  %v1674_v5 = vpop.f32.mrb[25].mxu0 }
 0x8e8   :  { %v1293_v6 = vpop.f32.mrb[26].mxu0 }
 0x8e9   :  { %v1302_v7 = vadd.f32 %v1447_v2, %v1291_v4  ;;  %v1675_v8 = vpop.f32.mrb[27].mxu0 }
 0x8eb   :  { %v1303_v9 = vsel %vm578_vm2, %v1302_v7, 0.0  ;;  %v1307_v10 = vmul.f32 %v1302_v7, %v1302_v7 }
 0x8ec   :  { %1304 = vadd.xlane.f32.xlu0 %v1303_v9 }
 0x8ed   :  { %v1308_v11 = vsel %vm578_vm2, %v1307_v10, 0.0 }
 0x8ee   :  { %1309 = vadd.xlane.f32.xlu1 %v1308_v11 }
 0x979   :  { %v1305_v12 = vpop.xlane.xlu0 %1304 }
 0x97a   :  { %v1306_v13 = vmul.f32 0.03125, %v1305_v12 }
 0x97b   :  { %v1310_v14 = vpop.xlane.xlu1 %1309 }
 0x97c   :  { %v1312_v15 = vmul.f32 %v1306_v13, %v1306_v13  ;;  %v1311_v16 = vmul.f32 0.03125, %v1310_v14  ;;  %v1315_v20 = vsub.f32 %v1302_v7, %v1306_v13 }
 0x97e   :  { %v1313_v17 = vsub.f32 %v1311_v16, %v1312_v15 }
 0x980   :  { %v1314_v18 = vmax.f32 %v1313_v17, 0.0 }
 0x982   :  { %v1316_v19 = vadd.f32 1e-05, %v1314_v18 }
 0x984   :  { %1768 = vrsqrt.f32 %v1316_v19 }
 0x98e   :  { %v1769_v21 = vpop.eup %1768 }
 0x98f   :  { %v1318_v23 = vmul.f32 %v1769_v21, %v1315_v20 }
 0x991   :  { %v1325_v25 = vmul.f32 %v1448_v22, %v1318_v23 }
 0x993   :  { %v1332_v26 = vadd.f32 %v1449_v24, %v1325_v25 }
 0x995   :  { %v1333_v27 = vpack.c.bf16 %v1332_v26, %v1332_v26 }
 0x997   :  { %1335 = vst.msk [vmem:[%s1371_s13] sm:$0x1] %vm1334_vm3, %v1333_v27 }

</bundles_post_ra>
